<compile_context>
chip_gen: v6e
topology: v6e:2x2x1
jax: 0.10.0
libtpu: 0.0.40
codegen_flags: <defaults>
</compile_context>

<pallas_src>
import math

import jax
import jax.numpy as jnp
from jax import lax
from jax.experimental import pallas as pl
from jax.experimental.pallas import tpu as pltpu

KH = KW = 4
PAD = 1
EPS = 1e-5
NEG_SLOPE = 0.2
LANES = 128
MATMUL_DTYPE = jnp.bfloat16   # MXU operand dtype; flip to jnp.float32 for exact-f32 path.


def _round_up(x, m):
    return (x + m - 1) // m * m


def _tpu_vmem_capacity_bytes():
    try:
        return int(pltpu.get_tpu_info().vmem_capacity_bytes)
    except Exception:
        return 64 << 20          # most conservative generation (v7x per-TC VMEM)


def _vmem_limit_bytes(per_call_estimate):
    cap = _tpu_vmem_capacity_bytes()
    return int(min(3 * cap // 4, max(32 << 20, 2 * per_call_estimate)))


# ----------------------------- kernels --------------------------------------
def _make_bn_stats_gemm_kernel(out_dtype):
    """y = A @ W (f32 accumulation) + per-image per-channel sum / sum-of-squares.

    No bias, no activation here: BatchNorm's mean subtraction cancels the conv
    bias exactly, and keeping the stats bias-free makes the zero rows of the M
    padding contribute nothing.  scale/shift + next-layer LeakyReLU are folded
    into the XLA glue that feeds the next layer (no second Pallas pass).
    """

    def kernel(a_ref, w_ref, o_ref, sum_ref, sq_ref):
        t = pl.program_id(1)
        y = jnp.dot(a_ref[0], w_ref[...], preferred_element_type=jnp.float32)

        @pl.when(t == 0)
        def _init():
            sum_ref[...] = jnp.zeros_like(sum_ref)
            sq_ref[...] = jnp.zeros_like(sq_ref)

        sum_ref[0] += jnp.sum(y, axis=0, keepdims=True)
        sq_ref[0] += jnp.sum(y * y, axis=0, keepdims=True)
        o_ref[0] = y.astype(out_dtype)

    return kernel


def _make_bias_act_gemm_kernel(out_act, out_dtype):
    """y = act(A @ W + bias) for layers without BatchNorm (conv1 / conv5)."""

    def kernel(a_ref, w_ref, b_ref, o_ref):
        y = jnp.dot(a_ref[0], w_ref[...], preferred_element_type=jnp.float32)
        y = y + b_ref[...]
        if out_act == "lrelu":
            y = jnp.maximum(y, NEG_SLOPE * y)          # 2 VALU ops
        elif out_act == "sigmoid":
            y = pl.reciprocal(1.0 + jnp.exp(-y), approx=True)   # EUP slot
        o_ref[0] = y.astype(out_dtype)

    return kernel


# --------------------------- layer wrapper -----------------------------------
def _im2col(h, stride, Ho, Wo):
    """(N,H,W,Cin) -> (N,Ho,Wo,KH*KW*Cin); column order (kh, kw, cin)."""
    N, H, W, Cin = h.shape
    xp = jnp.pad(h, ((0, 0), (PAD, PAD), (PAD, PAD), (0, 0)))
    cols = []
    for kh in range(KH):
        for kw in range(KW):
            cols.append(lax.slice(
                xp,
                (0, kh, kw, 0),
                (N, kh + stride * (Ho - 1) + 1, kw + stride * (Wo - 1) + 1, Cin),
                (1, stride, stride, 1)))
    return jnp.concatenate(cols, axis=-1)


def conv_block_forward(h, w_oihw, bias, gamma, beta, *,
                       stride, has_bn, out_act=None, final_f32=False):
    """One BuildConv layer.  Input `h` is NHWC and already activated (the
    module's input LeakyReLU is fused into the producing layer).  For BN
    layers the consumer's LeakyReLU is applied with the scale/shift fold in
    XLA; for non-BN layers `out_act` is fused into the kernel.
    Returns (N, Ho, Wo, Cout)."""
    N, H, W, Cin = h.shape
    Cout = w_oihw.shape[0]
    Ho = (H + 2 * PAD - KH) // stride + 1
    Wo = (W + 2 * PAD - KW) // stride + 1
    M = Ho * Wo
    K = KH * KW * Cin
    Kp = _round_up(K, LANES)
    Cpad = _round_up(Cout, LANES)

    TM = 256 if M >= 256 else _round_up(M, 8)     # f32 acc <= (256,128) = 32 vregs
    Mp = _round_up(M, TM)
    RT = Mp // TM

    # -------- XLA glue: im2col LHS (lane-dense K) and the weight matrix ------
    A = _im2col(h.astype(MATMUL_DTYPE), stride, Ho, Wo).reshape(N, M, K)
    A = jnp.pad(A, ((0, 0), (0, Mp - M), (0, Kp - K)))
    Wm = jnp.transpose(w_oihw, (2, 3, 1, 0)).reshape(K, Cout)     # (kh,kw,ci,co)
    Wm = jnp.pad(Wm, ((0, Kp - K), (0, Cpad - Cout))).astype(MATMUL_DTYPE)

    out_dtype = jnp.float32 if final_f32 else MATMUL_DTYPE
    out_isize = 4 if final_f32 else 2

    vmem_est = 2 * (TM * Kp * 2 + Kp * Cpad * 2 + TM * Cpad * out_isize) \
        + 8 * Cpad * 4 + (1 << 20)
    vmem_limit = _vmem_limit_bytes(vmem_est)
    cost = pl.CostEstimate(
        flops=2 * N * Mp * Kp * Cpad,
        transcendentals=(N * Mp * Cpad if out_act == "sigmoid" else 0),
        bytes_accessed=(N * Mp * Kp * 2 + Kp * Cpad * 2
                        + N * Mp * Cpad * out_isize
                        + (2 * N * Cpad * 4 if has_bn else Cpad * 4)))

    a_spec = pl.BlockSpec((1, TM, Kp), lambda n, t: (n, t, 0))
    w_spec = pl.BlockSpec((Kp, Cpad), lambda n, t: (0, 0))
    o_spec = pl.BlockSpec((1, TM, Cpad), lambda n, t: (n, t, 0))

    if has_bn:
        y, csum, csq = pl.pallas_call(
            _make_bn_stats_gemm_kernel(out_dtype),
            grid=(N, RT),
            in_specs=[a_spec, w_spec],
            out_specs=[o_spec,
                       pl.BlockSpec((1, 1, Cpad), lambda n, t: (n, 0, 0)),
                       pl.BlockSpec((1, 1, Cpad), lambda n, t: (n, 0, 0))],
            out_shape=[jax.ShapeDtypeStruct((N, Mp, Cpad), out_dtype),
                       jax.ShapeDtypeStruct((N, 1, Cpad), jnp.float32),
                       jax.ShapeDtypeStruct((N, 1, Cpad), jnp.float32)],
            compiler_params=pltpu.CompilerParams(
                # batch axis megacore-parallel (per-image stats partials);
                # row-tile axis revisits the stats block -> arbitrary.
                dimension_semantics=("parallel", "arbitrary"),
                vmem_limit_bytes=vmem_limit),
            cost_estimate=cost,
        )(A, Wm)

        # ---- hoisted BN fold + next layer's LeakyReLU (plain XLA; fuses with
        # the next layer's pad / im2col, so no extra Pallas pass) -------------
        cnt = float(N * M)                      # zero M-padding rows contribute 0
        s1 = jnp.sum(csum[:, 0, :Cout], axis=0)
        s2 = jnp.sum(csq[:, 0, :Cout], axis=0)
        mean_y = s1 / cnt
        var = jnp.maximum(s2 / cnt - mean_y * mean_y, 0.0)   # biased (training) var
        scale = gamma * lax.rsqrt(var + EPS)
        shift = beta - mean_y * scale           # conv bias cancels exactly under BN
        out = y[:, :M, :Cout].astype(jnp.float32) * scale + shift
        out = jnp.maximum(out, NEG_SLOPE * out)  # next layer's input LeakyReLU
        return out.reshape(N, Ho, Wo, Cout)

    # ----------------------- no BatchNorm (conv1 / conv5) --------------------
    b_row = jnp.pad(bias, (0, Cpad - Cout)).reshape(1, Cpad).astype(jnp.float32)
    y = pl.pallas_call(
        _make_bias_act_gemm_kernel(out_act, out_dtype),
        grid=(N, RT),
        in_specs=[a_spec, w_spec, pl.BlockSpec((1, Cpad), lambda n, t: (0, 0))],
        out_specs=o_spec,
        out_shape=jax.ShapeDtypeStruct((N, Mp, Cpad), out_dtype),
        compiler_params=pltpu.CompilerParams(
            dimension_semantics=("parallel", "parallel"),   # no accumulators
            vmem_limit_bytes=vmem_limit),
        cost_estimate=cost,
    )(A, Wm, b_row)
    return y[:, :M, :Cout].reshape(N, Ho, Wo, Cout)


# (stride, has_bn, fused output activation).  The module applies LeakyReLU to
# the *input* of conv2..conv5 and sigmoid to conv5's output; each is applied
# exactly once per element by the producing layer (in-kernel for non-BN
# layers, with the BN fold in XLA for BN layers).
_LAYER_CFG = [
    dict(stride=2, has_bn=False, out_act="lrelu"),    # conv1
    dict(stride=2, has_bn=True),                      # conv2
    dict(stride=2, has_bn=True),                      # conv3
    dict(stride=1, has_bn=True),                      # conv4
    dict(stride=1, has_bn=False, out_act="sigmoid"),  # conv5
]


@jax.jit
def discriminator_forward(x_nchw, label_nchw, params):
    """params: list of 5 tuples (w_oihw, bias, gamma, beta)."""
    h = jnp.concatenate([x_nchw, label_nchw], axis=1)    # NCHW
    h = jnp.transpose(h, (0, 2, 3, 1))                   # NHWC
    n_layers = len(params)
    for i, ((w, b, g, be), cfg) in enumerate(zip(params, _LAYER_CFG)):
        h = conv_block_forward(h, w, b, g, be, final_f32=(i == n_layers - 1), **cfg)
    return jnp.transpose(h, (0, 3, 1, 2)).astype(jnp.float32)    # NCHW


# ------------------------- pure-JAX f32 reference ---------------------------
def _build_conv_ref(x, w, b, gamma, beta, *, stride, has_bn, in_act):
    if in_act:
        x = jnp.where(x >= 0, x, NEG_SLOPE * x)
    y = lax.conv_general_dilated(
        x, w, window_strides=(stride, stride),
        padding=((PAD, PAD), (PAD, PAD)),
        dimension_numbers=("NCHW", "OIHW", "NCHW"),
    ) + b.reshape(1, -1, 1, 1)
    if has_bn:
        mean = y.mean(axis=(0, 2, 3), keepdims=True)
        var = ((y - mean) ** 2).mean(axis=(0, 2, 3), keepdims=True)
        y = ((y - mean) * lax.rsqrt(var + EPS) * gamma.reshape(1, -1, 1, 1)
             + beta.reshape(1, -1, 1, 1))
    return y


def discriminator_reference(x, label, params):
    """Mirrors the PyTorch module (training-mode BN), fully in f32."""
    h = jnp.concatenate([x, label], axis=1)
    cfg = [dict(stride=2, has_bn=False, in_act=False),
           dict(stride=2, has_bn=True, in_act=True),
           dict(stride=2, has_bn=True, in_act=True),
           dict(stride=1, has_bn=True, in_act=True),
           dict(stride=1, has_bn=False, in_act=True)]
    for (w, b, g, be), c in zip(params, cfg):
        h = _build_conv_ref(h, w, b, g, be, **c)
    return 1.0 / (1.0 + jnp.exp(-h))


if __name__ == "__main__":
    # Discriminator(input_dim=4, num_filters=4, output_dim=1).
    # x: 2 channels + label: 2 channels -> cat gives input_dim=4 channels.
    # Spatial 64 keeps all five k=4 convs valid (64->32->16->8->7->6) and
    # exercises the row-tiled grid (conv1 runs with 4 row tiles per image).
    N = 2
    x_ch, label_ch = 2, 2
    nf = 4
    out_dim = 1
    H = W = 64

    key = jax.random.PRNGKey(0)
    kx, kl, kp = jax.random.split(key, 3)
    x = jax.random.normal(kx, (N, x_ch, H, W), dtype=jnp.float32)
    label = jax.random.normal(kl, (N, label_ch, H, W), dtype=jnp.float32)

    layer_io = [(x_ch + label_ch, nf), (nf, nf * 2), (nf * 2, nf * 4),
                (nf * 4, nf * 8), (nf * 8, out_dim)]
    params = []
    for cin, cout in layer_io:
        kp, kw, kb = jax.random.split(kp, 3)
        # normal_weight_init(mean=0, std=0.02) for conv weights,
        # PyTorch-default uniform bias, BatchNorm affine gamma=1 / beta=0.
        w = 0.02 * jax.random.normal(kw, (cout, cin, KH, KW), dtype=jnp.float32)
        bound = 1.0 / math.sqrt(cin * KH * KW)
        b = jax.random.uniform(kb, (cout,), jnp.float32, -bound, bound)
        params.append((w, b,
                       jnp.ones((cout,), jnp.float32),
                       jnp.zeros((cout,), jnp.float32)))

    out = jax.block_until_ready(discriminator_forward(x, label, params))
    ref = jax.block_until_ready(discriminator_reference(x, label, params))

    assert out.shape == ref.shape == (N, out_dim, 6, 6), (out.shape, ref.shape)
    # bf16 MXU operands / bf16 intermediate storage (f32 accumulation and f32
    # BN statistics) vs. the pure-f32 reference; with MATMUL_DTYPE = float32
    # the match is ~1e-5.
    err = float(jnp.max(jnp.abs(out - ref)))
    assert err < 5e-2, err
    print("KERNEL_OK")
</pallas_src>

<mosaic_0001>
module attributes {stable_mosaic.version = 11 : i64} {
  func.func @kernel(%arg0: i32, %arg1: i32, %arg2: memref<1x256x128xbf16, #tpu.memory_space<vmem>>, %arg3: memref<128x128xbf16, #tpu.memory_space<vmem>>, %arg4: memref<1x128xf32, #tpu.memory_space<vmem>>, %arg5: memref<1x256x128xbf16, #tpu.memory_space<vmem>>) attributes {dimension_semantics = [#tpu.dimension_semantics<parallel>, #tpu.dimension_semantics<parallel>], iteration_bounds = array<i64: 2, 4>, scalar_prefetch = 0 : i64, scratch_operands = 0 : i64, tpu.core_type = #tpu.core_type<tc>, window_params = [{transform_indices = @transform_0, window_bounds = array<i64: 1, 256, 128>}, {pipeline_mode = #tpu.pipeline_mode<synchronous>, transform_indices = @transform_1, window_bounds = array<i64: 128, 128>}, {pipeline_mode = #tpu.pipeline_mode<synchronous>, transform_indices = @transform_2, window_bounds = array<i64: 1, 128>}, {transform_indices = @transform_3, window_bounds = array<i64: 1, 256, 128>}]} {
    %c0 = arith.constant 0 : index
    %c0_0 = arith.constant 0 : index
    %c0_1 = arith.constant 0 : index
    %0 = vector.load %arg2[%c0, %c0_0, %c0_1] : memref<1x256x128xbf16, #tpu.memory_space<vmem>>, vector<1x256x128xbf16>
    %1 = vector.shape_cast %0 : vector<1x256x128xbf16> to vector<256x128xbf16>
    %c0_2 = arith.constant 0 : index
    %c0_3 = arith.constant 0 : index
    %2 = vector.load %arg3[%c0_2, %c0_3] : memref<128x128xbf16, #tpu.memory_space<vmem>>, vector<128x128xbf16>
    %cst = arith.constant dense<0.000000e+00> : vector<256x128xf32>
    %3 = tpu.matmul %1, %2, %cst {dimension_numbers = #tpu.dot_dimension_numbers<[1], [0], [0], [1], [0, 0, 1, 1], [], []>} : vector<256x128xbf16>, vector<128x128xbf16>, vector<256x128xf32> -> vector<256x128xf32>
    %c0_4 = arith.constant 0 : index
    %c0_5 = arith.constant 0 : index
    %4 = vector.load %arg4[%c0_4, %c0_5] : memref<1x128xf32, #tpu.memory_space<vmem>>, vector<1x128xf32>
    %5 = vector.broadcast %4 : vector<1x128xf32> to vector<256x128xf32>
    %6 = arith.addf %3, %5 : vector<256x128xf32>
    %cst_6 = arith.constant 2.000000e-01 : f32
    %7 = vector.broadcast %cst_6 : f32 to vector<256x128xf32>
    %8 = arith.mulf %7, %6 : vector<256x128xf32>
    %9 = arith.maximumf %6, %8 : vector<256x128xf32>
    %10 = arith.truncf %9 : vector<256x128xf32> to vector<256x128xbf16>
    %c0_7 = arith.constant 0 : index
    %c0_8 = arith.constant 0 : index
    %c0_9 = arith.constant 0 : index
    %11 = vector.load %arg5[%c0_7, %c0_8, %c0_9] : memref<1x256x128xbf16, #tpu.memory_space<vmem>>, vector<1x256x128xbf16>
    %12 = vector.shape_cast %11 : vector<1x256x128xbf16> to vector<256x128xbf16>
    %13 = vector.shape_cast %10 : vector<256x128xbf16> to vector<1x256x128xbf16>
    tpu.vector_store %arg5[%c0_7, %c0_8, %c0_9], %13 {strides = array<i32>} : memref<1x256x128xbf16, #tpu.memory_space<vmem>>, vector<1x256x128xbf16>,
    return
  }
  func.func @transform_0(%arg0: i32, %arg1: i32) -> (i32, i32, i32) {
    %c0_i32 = arith.constant 0 : i32
    %c0_i32_0 = arith.constant 0 : i32
    return %arg0, %arg1, %c0_i32 : i32, i32, i32
  }
  func.func @transform_1(%arg0: i32, %arg1: i32) -> (i32, i32) {
    %c0_i32 = arith.constant 0 : i32
    %c0_i32_0 = arith.constant 0 : i32
    %c0_i32_1 = arith.constant 0 : i32
    return %c0_i32, %c0_i32_0 : i32, i32
  }
  func.func @transform_2(%arg0: i32, %arg1: i32) -> (i32, i32) {
    %c0_i32 = arith.constant 0 : i32
    %c0_i32_0 = arith.constant 0 : i32
    %c0_i32_1 = arith.constant 0 : i32
    return %c0_i32, %c0_i32_0 : i32, i32
  }
  func.func @transform_3(%arg0: i32, %arg1: i32) -> (i32, i32, i32) {
    %c0_i32 = arith.constant 0 : i32
    %c0_i32_0 = arith.constant 0 : i32
    return %arg0, %arg1, %c0_i32 : i32, i32, i32
  }
}

module attributes {stable_mosaic.version = 11 : i64} {
  func.func @kernel(%arg0: i32, %arg1: i32, %arg2: memref<1x256x128xbf16, #tpu.memory_space<vmem>>, %arg3: memref<128x128xbf16, #tpu.memory_space<vmem>>, %arg4: memref<1x256x128xbf16, #tpu.memory_space<vmem>>, %arg5: memref<1x1x128xf32, #tpu.memory_space<vmem>>, %arg6: memref<1x1x128xf32, #tpu.memory_space<vmem>>) attributes {dimension_semantics = [#tpu.dimension_semantics<parallel>, #tpu.dimension_semantics<arbitrary>], iteration_bounds = array<i64: 2, 1>, scalar_prefetch = 0 : i64, scratch_operands = 0 : i64, tpu.core_type = #tpu.core_type<tc>, window_params = [{transform_indices = @transform_0, window_bounds = array<i64: 1, 256, 128>}, {pipeline_mode = #tpu.pipeline_mode<synchronous>, transform_indices = @transform_1, window_bounds = array<i64: 128, 128>}, {transform_indices = @transform_2, window_bounds = array<i64: 1, 256, 128>}, {transform_indices = @transform_3, window_bounds = array<i64: 1, 1, 128>}, {transform_indices = @transform_4, window_bounds = array<i64: 1, 1, 128>}]} {
    %c0 = arith.constant 0 : index
    %c0_0 = arith.constant 0 : index
    %c0_1 = arith.constant 0 : index
    %0 = vector.load %arg2[%c0, %c0_0, %c0_1] : memref<1x256x128xbf16, #tpu.memory_space<vmem>>, vector<1x256x128xbf16>
    %1 = vector.shape_cast %0 : vector<1x256x128xbf16> to vector<256x128xbf16>
    %c0_2 = arith.constant 0 : index
    %c0_3 = arith.constant 0 : index
    %2 = vector.load %arg3[%c0_2, %c0_3] : memref<128x128xbf16, #tpu.memory_space<vmem>>, vector<128x128xbf16>
    %cst = arith.constant dense<0.000000e+00> : vector<256x128xf32>
    %3 = tpu.matmul %1, %2, %cst {dimension_numbers = #tpu.dot_dimension_numbers<[1], [0], [0], [1], [0, 0, 1, 1], [], []>} : vector<256x128xbf16>, vector<128x128xbf16>, vector<256x128xf32> -> vector<256x128xf32>
    %c0_i32 = arith.constant 0 : i32
    %4 = arith.cmpi eq, %arg1, %c0_i32 : i32
    %5 = arith.extui %4 : i1 to i32
    %c0_i32_4 = arith.constant 0 : i32
    %6 = arith.cmpi ne, %5, %c0_i32_4 : i32
    scf.if %6 {
      %cst_22 = arith.constant 0.000000e+00 : f32
      %28 = vector.broadcast %cst_22 : f32 to vector<1x1x128xf32>
      %c0_23 = arith.constant 0 : index
      %c0_24 = arith.constant 0 : index
      %c0_25 = arith.constant 0 : index
      %29 = vector.load %arg5[%c0_23, %c0_24, %c0_25] : memref<1x1x128xf32, #tpu.memory_space<vmem>>, vector<1x1x128xf32>
      tpu.vector_store %arg5[%c0_23, %c0_24, %c0_25], %28 {strides = array<i32>} : memref<1x1x128xf32, #tpu.memory_space<vmem>>, vector<1x1x128xf32>,
      %cst_26 = arith.constant 0.000000e+00 : f32
      %30 = vector.broadcast %cst_26 : f32 to vector<1x1x128xf32>
      %c0_27 = arith.constant 0 : index
      %c0_28 = arith.constant 0 : index
      %c0_29 = arith.constant 0 : index
      %31 = vector.load %arg6[%c0_27, %c0_28, %c0_29] : memref<1x1x128xf32, #tpu.memory_space<vmem>>, vector<1x1x128xf32>
      tpu.vector_store %arg6[%c0_27, %c0_28, %c0_29], %30 {strides = array<i32>} : memref<1x1x128xf32, #tpu.memory_space<vmem>>, vector<1x1x128xf32>,
    } else {
    }
    %c0_5 = arith.constant 0 : index
    %c0_6 = arith.constant 0 : index
    %c0_7 = arith.constant 0 : index
    %7 = vector.load %arg5[%c0_5, %c0_6, %c0_7] : memref<1x1x128xf32, #tpu.memory_space<vmem>>, vector<1x1x128xf32>
    %8 = vector.shape_cast %7 : vector<1x1x128xf32> to vector<1x128xf32>
    %cst_8 = arith.constant dense<0.000000e+00> : vector<128xf32>
    %9 = vector.multi_reduction <add>, %3, %cst_8 [0] : vector<256x128xf32> to vector<128xf32>
    %10 = vector.shape_cast %9 : vector<128xf32> to vector<1x128xf32>
    %11 = arith.addf %8, %10 : vector<1x128xf32>
    %c0_9 = arith.constant 0 : index
    %c0_10 = arith.constant 0 : index
    %c0_11 = arith.constant 0 : index
    %12 = vector.load %arg5[%c0_9, %c0_10, %c0_11] : memref<1x1x128xf32, #tpu.memory_space<vmem>>, vector<1x1x128xf32>
    %13 = vector.shape_cast %12 : vector<1x1x128xf32> to vector<1x128xf32>
    %14 = vector.shape_cast %11 : vector<1x128xf32> to vector<1x1x128xf32>
    tpu.vector_store %arg5[%c0_9, %c0_10, %c0_11], %14 {strides = array<i32>} : memref<1x1x128xf32, #tpu.memory_space<vmem>>, vector<1x1x128xf32>,
    %c0_12 = arith.constant 0 : index
    %c0_13 = arith.constant 0 : index
    %c0_14 = arith.constant 0 : index
    %15 = vector.load %arg6[%c0_12, %c0_13, %c0_14] : memref<1x1x128xf32, #tpu.memory_space<vmem>>, vector<1x1x128xf32>
    %16 = vector.shape_cast %15 : vector<1x1x128xf32> to vector<1x128xf32>
    %17 = arith.mulf %3, %3 : vector<256x128xf32>
    %cst_15 = arith.constant dense<0.000000e+00> : vector<128xf32>
    %18 = vector.multi_reduction <add>, %17, %cst_15 [0] : vector<256x128xf32> to vector<128xf32>
    %19 = vector.shape_cast %18 : vector<128xf32> to vector<1x128xf32>
    %20 = arith.addf %16, %19 : vector<1x128xf32>
    %c0_16 = arith.constant 0 : index
    %c0_17 = arith.constant 0 : index
    %c0_18 = arith.constant 0 : index
    %21 = vector.load %arg6[%c0_16, %c0_17, %c0_18] : memref<1x1x128xf32, #tpu.memory_space<vmem>>, vector<1x1x128xf32>
    %22 = vector.shape_cast %21 : vector<1x1x128xf32> to vector<1x128xf32>
    %23 = vector.shape_cast %20 : vector<1x128xf32> to vector<1x1x128xf32>
    tpu.vector_store %arg6[%c0_16, %c0_17, %c0_18], %23 {strides = array<i32>} : memref<1x1x128xf32, #tpu.memory_space<vmem>>, vector<1x1x128xf32>,
    %24 = arith.truncf %3 : vector<256x128xf32> to vector<256x128xbf16>
    %c0_19 = arith.constant 0 : index
    %c0_20 = arith.constant 0 : index
    %c0_21 = arith.constant 0 : index
    %25 = vector.load %arg4[%c0_19, %c0_20, %c0_21] : memref<1x256x128xbf16, #tpu.memory_space<vmem>>, vector<1x256x128xbf16>
    %26 = vector.shape_cast %25 : vector<1x256x128xbf16> to vector<256x128xbf16>
    %27 = vector.shape_cast %24 : vector<256x128xbf16> to vector<1x256x128xbf16>
    tpu.vector_store %arg4[%c0_19, %c0_20, %c0_21], %27 {strides = array<i32>} : memref<1x256x128xbf16, #tpu.memory_space<vmem>>, vector<1x256x128xbf16>,
    return
  }
  func.func @transform_0(%arg0: i32, %arg1: i32) -> (i32, i32, i32) {
    %c0_i32 = arith.constant 0 : i32
    %c0_i32_0 = arith.constant 0 : i32
    return %arg0, %arg1, %c0_i32 : i32, i32, i32
  }
  func.func @transform_1(%arg0: i32, %arg1: i32) -> (i32, i32) {
    %c0_i32 = arith.constant 0 : i32
    %c0_i32_0 = arith.constant 0 : i32
    %c0_i32_1 = arith.constant 0 : i32
    return %c0_i32, %c0_i32_0 : i32, i32
  }
  func.func @transform_2(%arg0: i32, %arg1: i32) -> (i32, i32, i32) {
    %c0_i32 = arith.constant 0 : i32
    %c0_i32_0 = arith.constant 0 : i32
    return %arg0, %arg1, %c0_i32 : i32, i32, i32
  }
  func.func @transform_3(%arg0: i32, %arg1: i32) -> (i32, i32, i32) {
    %c0_i32 = arith.constant 0 : i32
    %c0_i32_0 = arith.constant 0 : i32
    %c0_i32_1 = arith.constant 0 : i32
    return %arg0, %c0_i32, %c0_i32_0 : i32, i32, i32
  }
  func.func @transform_4(%arg0: i32, %arg1: i32) -> (i32, i32, i32) {
    %c0_i32 = arith.constant 0 : i32
    %c0_i32_0 = arith.constant 0 : i32
    %c0_i32_1 = arith.constant 0 : i32
    return %arg0, %c0_i32, %c0_i32_0 : i32, i32, i32
  }
}

module attributes {stable_mosaic.version = 11 : i64} {
  func.func @kernel(%arg0: i32, %arg1: i32, %arg2: memref<1x64x128xbf16, #tpu.memory_space<vmem>>, %arg3: memref<128x128xbf16, #tpu.memory_space<vmem>>, %arg4: memref<1x64x128xbf16, #tpu.memory_space<vmem>>, %arg5: memref<1x1x128xf32, #tpu.memory_space<vmem>>, %arg6: memref<1x1x128xf32, #tpu.memory_space<vmem>>) attributes {dimension_semantics = [#tpu.dimension_semantics<parallel>, #tpu.dimension_semantics<arbitrary>], iteration_bounds = array<i64: 2, 1>, scalar_prefetch = 0 : i64, scratch_operands = 0 : i64, tpu.core_type = #tpu.core_type<tc>, window_params = [{transform_indices = @transform_0, window_bounds = array<i64: 1, 64, 128>}, {pipeline_mode = #tpu.pipeline_mode<synchronous>, transform_indices = @transform_1, window_bounds = array<i64: 128, 128>}, {transform_indices = @transform_2, window_bounds = array<i64: 1, 64, 128>}, {transform_indices = @transform_3, window_bounds = array<i64: 1, 1, 128>}, {transform_indices = @transform_4, window_bounds = array<i64: 1, 1, 128>}]} {
    %c0 = arith.constant 0 : index
    %c0_0 = arith.constant 0 : index
    %c0_1 = arith.constant 0 : index
    %0 = vector.load %arg2[%c0, %c0_0, %c0_1] : memref<1x64x128xbf16, #tpu.memory_space<vmem>>, vector<1x64x128xbf16>
    %1 = vector.shape_cast %0 : vector<1x64x128xbf16> to vector<64x128xbf16>
    %c0_2 = arith.constant 0 : index
    %c0_3 = arith.constant 0 : index
    %2 = vector.load %arg3[%c0_2, %c0_3] : memref<128x128xbf16, #tpu.memory_space<vmem>>, vector<128x128xbf16>
    %cst = arith.constant dense<0.000000e+00> : vector<64x128xf32>
    %3 = tpu.matmul %1, %2, %cst {dimension_numbers = #tpu.dot_dimension_numbers<[1], [0], [0], [1], [0, 0, 1, 1], [], []>} : vector<64x128xbf16>, vector<128x128xbf16>, vector<64x128xf32> -> vector<64x128xf32>
    %c0_i32 = arith.constant 0 : i32
    %4 = arith.cmpi eq, %arg1, %c0_i32 : i32
    %5 = arith.extui %4 : i1 to i32
    %c0_i32_4 = arith.constant 0 : i32
    %6 = arith.cmpi ne, %5, %c0_i32_4 : i32
    scf.if %6 {
      %cst_22 = arith.constant 0.000000e+00 : f32
      %28 = vector.broadcast %cst_22 : f32 to vector<1x1x128xf32>
      %c0_23 = arith.constant 0 : index
      %c0_24 = arith.constant 0 : index
      %c0_25 = arith.constant 0 : index
      %29 = vector.load %arg5[%c0_23, %c0_24, %c0_25] : memref<1x1x128xf32, #tpu.memory_space<vmem>>, vector<1x1x128xf32>
      tpu.vector_store %arg5[%c0_23, %c0_24, %c0_25], %28 {strides = array<i32>} : memref<1x1x128xf32, #tpu.memory_space<vmem>>, vector<1x1x128xf32>,
      %cst_26 = arith.constant 0.000000e+00 : f32
      %30 = vector.broadcast %cst_26 : f32 to vector<1x1x128xf32>
      %c0_27 = arith.constant 0 : index
      %c0_28 = arith.constant 0 : index
      %c0_29 = arith.constant 0 : index
      %31 = vector.load %arg6[%c0_27, %c0_28, %c0_29] : memref<1x1x128xf32, #tpu.memory_space<vmem>>, vector<1x1x128xf32>
      tpu.vector_store %arg6[%c0_27, %c0_28, %c0_29], %30 {strides = array<i32>} : memref<1x1x128xf32, #tpu.memory_space<vmem>>, vector<1x1x128xf32>,
    } else {
    }
    %c0_5 = arith.constant 0 : index
    %c0_6 = arith.constant 0 : index
    %c0_7 = arith.constant 0 : index
    %7 = vector.load %arg5[%c0_5, %c0_6, %c0_7] : memref<1x1x128xf32, #tpu.memory_space<vmem>>, vector<1x1x128xf32>
    %8 = vector.shape_cast %7 : vector<1x1x128xf32> to vector<1x128xf32>
    %cst_8 = arith.constant dense<0.000000e+00> : vector<128xf32>
    %9 = vector.multi_reduction <add>, %3, %cst_8 [0] : vector<64x128xf32> to vector<128xf32>
    %10 = vector.shape_cast %9 : vector<128xf32> to vector<1x128xf32>
    %11 = arith.addf %8, %10 : vector<1x128xf32>
    %c0_9 = arith.constant 0 : index
    %c0_10 = arith.constant 0 : index
    %c0_11 = arith.constant 0 : index
    %12 = vector.load %arg5[%c0_9, %c0_10, %c0_11] : memref<1x1x128xf32, #tpu.memory_space<vmem>>, vector<1x1x128xf32>
    %13 = vector.shape_cast %12 : vector<1x1x128xf32> to vector<1x128xf32>
    %14 = vector.shape_cast %11 : vector<1x128xf32> to vector<1x1x128xf32>
    tpu.vector_store %arg5[%c0_9, %c0_10, %c0_11], %14 {strides = array<i32>} : memref<1x1x128xf32, #tpu.memory_space<vmem>>, vector<1x1x128xf32>,
    %c0_12 = arith.constant 0 : index
    %c0_13 = arith.constant 0 : index
    %c0_14 = arith.constant 0 : index
    %15 = vector.load %arg6[%c0_12, %c0_13, %c0_14] : memref<1x1x128xf32, #tpu.memory_space<vmem>>, vector<1x1x128xf32>
    %16 = vector.shape_cast %15 : vector<1x1x128xf32> to vector<1x128xf32>
    %17 = arith.mulf %3, %3 : vector<64x128xf32>
    %cst_15 = arith.constant dense<0.000000e+00> : vector<128xf32>
    %18 = vector.multi_reduction <add>, %17, %cst_15 [0] : vector<64x128xf32> to vector<128xf32>
    %19 = vector.shape_cast %18 : vector<128xf32> to vector<1x128xf32>
    %20 = arith.addf %16, %19 : vector<1x128xf32>
    %c0_16 = arith.constant 0 : index
    %c0_17 = arith.constant 0 : index
    %c0_18 = arith.constant 0 : index
    %21 = vector.load %arg6[%c0_16, %c0_17, %c0_18] : memref<1x1x128xf32, #tpu.memory_space<vmem>>, vector<1x1x128xf32>
    %22 = vector.shape_cast %21 : vector<1x1x128xf32> to vector<1x128xf32>
    %23 = vector.shape_cast %20 : vector<1x128xf32> to vector<1x1x128xf32>
    tpu.vector_store %arg6[%c0_16, %c0_17, %c0_18], %23 {strides = array<i32>} : memref<1x1x128xf32, #tpu.memory_space<vmem>>, vector<1x1x128xf32>,
    %24 = arith.truncf %3 : vector<64x128xf32> to vector<64x128xbf16>
    %c0_19 = arith.constant 0 : index
    %c0_20 = arith.constant 0 : index
    %c0_21 = arith.constant 0 : index
    %25 = vector.load %arg4[%c0_19, %c0_20, %c0_21] : memref<1x64x128xbf16, #tpu.memory_space<vmem>>, vector<1x64x128xbf16>
    %26 = vector.shape_cast %25 : vector<1x64x128xbf16> to vector<64x128xbf16>
    %27 = vector.shape_cast %24 : vector<64x128xbf16> to vector<1x64x128xbf16>
    tpu.vector_store %arg4[%c0_19, %c0_20, %c0_21], %27 {strides = array<i32>} : memref<1x64x128xbf16, #tpu.memory_space<vmem>>, vector<1x64x128xbf16>,
    return
  }
  func.func @transform_0(%arg0: i32, %arg1: i32) -> (i32, i32, i32) {
    %c0_i32 = arith.constant 0 : i32
    %c0_i32_0 = arith.constant 0 : i32
    return %arg0, %arg1, %c0_i32 : i32, i32, i32
  }
  func.func @transform_1(%arg0: i32, %arg1: i32) -> (i32, i32) {
    %c0_i32 = arith.constant 0 : i32
    %c0_i32_0 = arith.constant 0 : i32
    %c0_i32_1 = arith.constant 0 : i32
    return %c0_i32, %c0_i32_0 : i32, i32
  }
  func.func @transform_2(%arg0: i32, %arg1: i32) -> (i32, i32, i32) {
    %c0_i32 = arith.constant 0 : i32
    %c0_i32_0 = arith.constant 0 : i32
    return %arg0, %arg1, %c0_i32 : i32, i32, i32
  }
  func.func @transform_3(%arg0: i32, %arg1: i32) -> (i32, i32, i32) {
    %c0_i32 = arith.constant 0 : i32
    %c0_i32_0 = arith.constant 0 : i32
    %c0_i32_1 = arith.constant 0 : i32
    return %arg0, %c0_i32, %c0_i32_0 : i32, i32, i32
  }
  func.func @transform_4(%arg0: i32, %arg1: i32) -> (i32, i32, i32) {
    %c0_i32 = arith.constant 0 : i32
    %c0_i32_0 = arith.constant 0 : i32
    %c0_i32_1 = arith.constant 0 : i32
    return %arg0, %c0_i32, %c0_i32_0 : i32, i32, i32
  }
}

module attributes {stable_mosaic.version = 11 : i64} {
  func.func @kernel(%arg0: i32, %arg1: i32, %arg2: memref<1x56x256xbf16, #tpu.memory_space<vmem>>, %arg3: memref<256x128xbf16, #tpu.memory_space<vmem>>, %arg4: memref<1x56x128xbf16, #tpu.memory_space<vmem>>, %arg5: memref<1x1x128xf32, #tpu.memory_space<vmem>>, %arg6: memref<1x1x128xf32, #tpu.memory_space<vmem>>) attributes {dimension_semantics = [#tpu.dimension_semantics<parallel>, #tpu.dimension_semantics<arbitrary>], iteration_bounds = array<i64: 2, 1>, scalar_prefetch = 0 : i64, scratch_operands = 0 : i64, tpu.core_type = #tpu.core_type<tc>, window_params = [{transform_indices = @transform_0, window_bounds = array<i64: 1, 56, 256>}, {pipeline_mode = #tpu.pipeline_mode<synchronous>, transform_indices = @transform_1, window_bounds = array<i64: 256, 128>}, {transform_indices = @transform_2, window_bounds = array<i64: 1, 56, 128>}, {transform_indices = @transform_3, window_bounds = array<i64: 1, 1, 128>}, {transform_indices = @transform_4, window_bounds = array<i64: 1, 1, 128>}]} {
    %c0 = arith.constant 0 : index
    %c0_0 = arith.constant 0 : index
    %c0_1 = arith.constant 0 : index
    %0 = vector.load %arg2[%c0, %c0_0, %c0_1] : memref<1x56x256xbf16, #tpu.memory_space<vmem>>, vector<1x56x256xbf16>
    %1 = vector.shape_cast %0 : vector<1x56x256xbf16> to vector<56x256xbf16>
    %c0_2 = arith.constant 0 : index
    %c0_3 = arith.constant 0 : index
    %2 = vector.load %arg3[%c0_2, %c0_3] : memref<256x128xbf16, #tpu.memory_space<vmem>>, vector<256x128xbf16>
    %cst = arith.constant dense<0.000000e+00> : vector<56x128xf32>
    %3 = tpu.matmul %1, %2, %cst {dimension_numbers = #tpu.dot_dimension_numbers<[1], [0], [0], [1], [0, 0, 1, 1], [], []>} : vector<56x256xbf16>, vector<256x128xbf16>, vector<56x128xf32> -> vector<56x128xf32>
    %c0_i32 = arith.constant 0 : i32
    %4 = arith.cmpi eq, %arg1, %c0_i32 : i32
    %5 = arith.extui %4 : i1 to i32
    %c0_i32_4 = arith.constant 0 : i32
    %6 = arith.cmpi ne, %5, %c0_i32_4 : i32
    scf.if %6 {
      %cst_22 = arith.constant 0.000000e+00 : f32
      %28 = vector.broadcast %cst_22 : f32 to vector<1x1x128xf32>
      %c0_23 = arith.constant 0 : index
      %c0_24 = arith.constant 0 : index
      %c0_25 = arith.constant 0 : index
      %29 = vector.load %arg5[%c0_23, %c0_24, %c0_25] : memref<1x1x128xf32, #tpu.memory_space<vmem>>, vector<1x1x128xf32>
      tpu.vector_store %arg5[%c0_23, %c0_24, %c0_25], %28 {strides = array<i32>} : memref<1x1x128xf32, #tpu.memory_space<vmem>>, vector<1x1x128xf32>,
      %cst_26 = arith.constant 0.000000e+00 : f32
      %30 = vector.broadcast %cst_26 : f32 to vector<1x1x128xf32>
      %c0_27 = arith.constant 0 : index
      %c0_28 = arith.constant 0 : index
      %c0_29 = arith.constant 0 : index
      %31 = vector.load %arg6[%c0_27, %c0_28, %c0_29] : memref<1x1x128xf32, #tpu.memory_space<vmem>>, vector<1x1x128xf32>
      tpu.vector_store %arg6[%c0_27, %c0_28, %c0_29], %30 {strides = array<i32>} : memref<1x1x128xf32, #tpu.memory_space<vmem>>, vector<1x1x128xf32>,
    } else {
    }
    %c0_5 = arith.constant 0 : index
    %c0_6 = arith.constant 0 : index
    %c0_7 = arith.constant 0 : index
    %7 = vector.load %arg5[%c0_5, %c0_6, %c0_7] : memref<1x1x128xf32, #tpu.memory_space<vmem>>, vector<1x1x128xf32>
    %8 = vector.shape_cast %7 : vector<1x1x128xf32> to vector<1x128xf32>
    %cst_8 = arith.constant dense<0.000000e+00> : vector<128xf32>
    %9 = vector.multi_reduction <add>, %3, %cst_8 [0] : vector<56x128xf32> to vector<128xf32>
    %10 = vector.shape_cast %9 : vector<128xf32> to vector<1x128xf32>
    %11 = arith.addf %8, %10 : vector<1x128xf32>
    %c0_9 = arith.constant 0 : index
    %c0_10 = arith.constant 0 : index
    %c0_11 = arith.constant 0 : index
    %12 = vector.load %arg5[%c0_9, %c0_10, %c0_11] : memref<1x1x128xf32, #tpu.memory_space<vmem>>, vector<1x1x128xf32>
    %13 = vector.shape_cast %12 : vector<1x1x128xf32> to vector<1x128xf32>
    %14 = vector.shape_cast %11 : vector<1x128xf32> to vector<1x1x128xf32>
    tpu.vector_store %arg5[%c0_9, %c0_10, %c0_11], %14 {strides = array<i32>} : memref<1x1x128xf32, #tpu.memory_space<vmem>>, vector<1x1x128xf32>,
    %c0_12 = arith.constant 0 : index
    %c0_13 = arith.constant 0 : index
    %c0_14 = arith.constant 0 : index
    %15 = vector.load %arg6[%c0_12, %c0_13, %c0_14] : memref<1x1x128xf32, #tpu.memory_space<vmem>>, vector<1x1x128xf32>
    %16 = vector.shape_cast %15 : vector<1x1x128xf32> to vector<1x128xf32>
    %17 = arith.mulf %3, %3 : vector<56x128xf32>
    %cst_15 = arith.constant dense<0.000000e+00> : vector<128xf32>
    %18 = vector.multi_reduction <add>, %17, %cst_15 [0] : vector<56x128xf32> to vector<128xf32>
    %19 = vector.shape_cast %18 : vector<128xf32> to vector<1x128xf32>
    %20 = arith.addf %16, %19 : vector<1x128xf32>
    %c0_16 = arith.constant 0 : index
    %c0_17 = arith.constant 0 : index
    %c0_18 = arith.constant 0 : index
    %21 = vector.load %arg6[%c0_16, %c0_17, %c0_18] : memref<1x1x128xf32, #tpu.memory_space<vmem>>, vector<1x1x128xf32>
    %22 = vector.shape_cast %21 : vector<1x1x128xf32> to vector<1x128xf32>
    %23 = vector.shape_cast %20 : vector<1x128xf32> to vector<1x1x128xf32>
    tpu.vector_store %arg6[%c0_16, %c0_17, %c0_18], %23 {strides = array<i32>} : memref<1x1x128xf32, #tpu.memory_space<vmem>>, vector<1x1x128xf32>,
    %24 = arith.truncf %3 : vector<56x128xf32> to vector<56x128xbf16>
    %c0_19 = arith.constant 0 : index
    %c0_20 = arith.constant 0 : index
    %c0_21 = arith.constant 0 : index
    %25 = vector.load %arg4[%c0_19, %c0_20, %c0_21] : memref<1x56x128xbf16, #tpu.memory_space<vmem>>, vector<1x56x128xbf16>
    %26 = vector.shape_cast %25 : vector<1x56x128xbf16> to vector<56x128xbf16>
    %27 = vector.shape_cast %24 : vector<56x128xbf16> to vector<1x56x128xbf16>
    tpu.vector_store %arg4[%c0_19, %c0_20, %c0_21], %27 {strides = array<i32>} : memref<1x56x128xbf16, #tpu.memory_space<vmem>>, vector<1x56x128xbf16>,
    return
  }
  func.func @transform_0(%arg0: i32, %arg1: i32) -> (i32, i32, i32) {
    %c0_i32 = arith.constant 0 : i32
    %c0_i32_0 = arith.constant 0 : i32
    return %arg0, %arg1, %c0_i32 : i32, i32, i32
  }
  func.func @transform_1(%arg0: i32, %arg1: i32) -> (i32, i32) {
    %c0_i32 = arith.constant 0 : i32
    %c0_i32_0 = arith.constant 0 : i32
    %c0_i32_1 = arith.constant 0 : i32
    return %c0_i32, %c0_i32_0 : i32, i32
  }
  func.func @transform_2(%arg0: i32, %arg1: i32) -> (i32, i32, i32) {
    %c0_i32 = arith.constant 0 : i32
    %c0_i32_0 = arith.constant 0 : i32
    return %arg0, %arg1, %c0_i32 : i32, i32, i32
  }
  func.func @transform_3(%arg0: i32, %arg1: i32) -> (i32, i32, i32) {
    %c0_i32 = arith.constant 0 : i32
    %c0_i32_0 = arith.constant 0 : i32
    %c0_i32_1 = arith.constant 0 : i32
    return %arg0, %c0_i32, %c0_i32_0 : i32, i32, i32
  }
  func.func @transform_4(%arg0: i32, %arg1: i32) -> (i32, i32, i32) {
    %c0_i32 = arith.constant 0 : i32
    %c0_i32_0 = arith.constant 0 : i32
    %c0_i32_1 = arith.constant 0 : i32
    return %arg0, %c0_i32, %c0_i32_0 : i32, i32, i32
  }
}

module attributes {stable_mosaic.version = 11 : i64} {
  func.func @kernel(%arg0: i32, %arg1: i32, %arg2: memref<1x40x512xbf16, #tpu.memory_space<vmem>>, %arg3: memref<512x128xbf16, #tpu.memory_space<vmem>>, %arg4: memref<1x128xf32, #tpu.memory_space<vmem>>, %arg5: memref<1x40x128xf32, #tpu.memory_space<vmem>>) attributes {dimension_semantics = [#tpu.dimension_semantics<parallel>, #tpu.dimension_semantics<parallel>], iteration_bounds = array<i64: 2, 1>, scalar_prefetch = 0 : i64, scratch_operands = 0 : i64, tpu.core_type = #tpu.core_type<tc>, window_params = [{transform_indices = @transform_0, window_bounds = array<i64: 1, 40, 512>}, {pipeline_mode = #tpu.pipeline_mode<synchronous>, transform_indices = @transform_1, window_bounds = array<i64: 512, 128>}, {pipeline_mode = #tpu.pipeline_mode<synchronous>, transform_indices = @transform_2, window_bounds = array<i64: 1, 128>}, {transform_indices = @transform_3, window_bounds = array<i64: 1, 40, 128>}]} {
    %c0 = arith.constant 0 : index
    %c0_0 = arith.constant 0 : index
    %c0_1 = arith.constant 0 : index
    %0 = vector.load %arg2[%c0, %c0_0, %c0_1] : memref<1x40x512xbf16, #tpu.memory_space<vmem>>, vector<1x40x512xbf16>
    %1 = vector.shape_cast %0 : vector<1x40x512xbf16> to vector<40x512xbf16>
    %c0_2 = arith.constant 0 : index
    %c0_3 = arith.constant 0 : index
    %2 = vector.load %arg3[%c0_2, %c0_3] : memref<512x128xbf16, #tpu.memory_space<vmem>>, vector<512x128xbf16>
    %cst = arith.constant dense<0.000000e+00> : vector<40x128xf32>
    %3 = tpu.matmul %1, %2, %cst {dimension_numbers = #tpu.dot_dimension_numbers<[1], [0], [0], [1], [0, 0, 1, 1], [], []>} : vector<40x512xbf16>, vector<512x128xbf16>, vector<40x128xf32> -> vector<40x128xf32>
    %c0_4 = arith.constant 0 : index
    %c0_5 = arith.constant 0 : index
    %4 = vector.load %arg4[%c0_4, %c0_5] : memref<1x128xf32, #tpu.memory_space<vmem>>, vector<1x128xf32>
    %5 = vector.broadcast %4 : vector<1x128xf32> to vector<40x128xf32>
    %6 = arith.addf %3, %5 : vector<40x128xf32>
    %cst_6 = arith.constant 0.000000e+00 : f32
    %7 = vector.broadcast %cst_6 : f32 to vector<40x128xf32>
    %8 = arith.subf %7, %6 : vector<40x128xf32>
    %9 = math.exp %8 : vector<40x128xf32>
    %cst_7 = arith.constant 1.000000e+00 : f32
    %10 = vector.broadcast %cst_7 : f32 to vector<40x128xf32>
    %11 = arith.addf %10, %9 : vector<40x128xf32>
    %12 = tpu.reciprocal %11 {approx = true} : vector<40x128xf32> -> vector<40x128xf32>
    %c0_8 = arith.constant 0 : index
    %c0_9 = arith.constant 0 : index
    %c0_10 = arith.constant 0 : index
    %13 = vector.load %arg5[%c0_8, %c0_9, %c0_10] : memref<1x40x128xf32, #tpu.memory_space<vmem>>, vector<1x40x128xf32>
    %14 = vector.shape_cast %13 : vector<1x40x128xf32> to vector<40x128xf32>
    %15 = vector.shape_cast %12 : vector<40x128xf32> to vector<1x40x128xf32>
    tpu.vector_store %arg5[%c0_8, %c0_9, %c0_10], %15 {strides = array<i32>} : memref<1x40x128xf32, #tpu.memory_space<vmem>>, vector<1x40x128xf32>,
    return
  }
  func.func @transform_0(%arg0: i32, %arg1: i32) -> (i32, i32, i32) {
    %c0_i32 = arith.constant 0 : i32
    %c0_i32_0 = arith.constant 0 : i32
    return %arg0, %arg1, %c0_i32 : i32, i32, i32
  }
  func.func @transform_1(%arg0: i32, %arg1: i32) -> (i32, i32) {
    %c0_i32 = arith.constant 0 : i32
    %c0_i32_0 = arith.constant 0 : i32
    %c0_i32_1 = arith.constant 0 : i32
    return %c0_i32, %c0_i32_0 : i32, i32
  }
  func.func @transform_2(%arg0: i32, %arg1: i32) -> (i32, i32) {
    %c0_i32 = arith.constant 0 : i32
    %c0_i32_0 = arith.constant 0 : i32
    %c0_i32_1 = arith.constant 0 : i32
    return %c0_i32, %c0_i32_0 : i32, i32
  }
  func.func @transform_3(%arg0: i32, %arg1: i32) -> (i32, i32, i32) {
    %c0_i32 = arith.constant 0 : i32
    %c0_i32_0 = arith.constant 0 : i32
    return %arg0, %arg1, %c0_i32 : i32, i32, i32
  }
}

</mosaic_0001>

<bundles_post_ra>
// kernel: discriminator_forward.5
= control target key start
LH: loop header
LB: loop body
LE: loop exit
PB: predicated region body
PF: predicated region fallthrough
CT: control target
= control target key end

     0   :  { %s1294_s12 = smov 0   ;;  %s1296_s13 = smov 0   ;;  %s1452_s0 = inlined_call_operand.vmem [shape: bf16[2,1024,128], index: 0, kind: input, shape index: {}]   ;;  %s1453_s1 = inlined_call_operand.vmem [shape: bf16[128,128], index: 1, kind: input, shape index: {}]   ;;  %s1454_s2 = inlined_call_operand.vmem [shape: f32[1,128], index: 2, kind: input, shape index: {}]   ;;  %s1455_s3 = inlined_call_operand.vmem [shape: bf16[2,1024,128], index: 3, kind: output, shape index: {}]  }
   0x1   :  { %s1298_s14 = smov 0   ;;  %s1300_s15 = smov 0  }
   0x2   :  { %s1302_s16 = smov 0  }
   0x3 LB: > { %s22_s17 = sadd.s32 1, %s1264_s14  ;;  %s25_s18 = sadd.s32 1, %s1268_s15  ;;  %s1272_s16 = sphi %s1302_s16, %s13_s16   ;;  %s1268_s15 = sphi %s1300_s15, %s1459_s15   ;;  %s1264_s14 = sphi %s1298_s14, %s1458_s14   ;;  %s1260_s13 = sphi %s1296_s13, %s1457_s13   ;;  %s1256_s12 = sphi %s1294_s12, %s1456_s12  }
   0x4   : > { %p23_p0 = scmp.ge.s32.totalorder %s22_s17, 4  ;;  %p889_p1 = scmp.ge.s32.totalorder %s1272_s16, 1 }
   0x5   : > { %p158_p2 = scmp.lt.s32.totalorder %s1272_s16, 9 }
   0x6   : > { %s1461_s17 = smov (%p23_p0, %s22_s17), 0  ;;  %s1463_s18 = smov (!%p23_p0, %s25_s18), %s1268_s15 }
   0x7   : > { %p159_p3 = pnand %p889_p1, %p158_p2  ;;  %p27_p4 = scmp.ge.s32.totalorder %s1463_s18, 2 }
   0x8   : > { %s890_s21 = sshll.u32 (!%p159_p3), %s1256_s12, 5  ;;  %p191_p5 = scmp.lt.s32.totalorder (!%p159_p3), %s1260_s13, 1 }
   0x9   : > { %s1465_s18 = smov (%p27_p4, %s1463_s18), 0  ;;  %162 = sbr.rel (%p159_p3) target bundleno = 279 (0x117), region = 32 }
   0xa   : > { %p193_p6 = scmp.lt.s32.totalorder (!%p159_p3), %s890_s21, 127 }
   0xe   : > { %v1210_v0 = vld [vmem:[%s1453_s1 + $0x38] sm:$0xff]   ;;  %v1211_v1 = vld [vmem:[%s1453_s1 + $0x30] sm:$0xff]   ;;  %s1467_s13 = smov (!%p191_p5, %s1260_s13), 1  ;;  %v1212_v2 = vld [vmem:[%s1453_s1 + $0x28] sm:$0xff]   ;;  %s1469_s21 = smov (!%p193_p6, %s890_s21), 127 }
   0xf   : > { %1106 = vmatprep.subr.bf16.mxu0 %v1210_v0  ;;  %1154 = vmatprep.subr.bf16.mxu1 %v1210_v0  ;;  %s891_s26 = sshll.u32 %s1467_s13, 7  ;;  %v1213_v3 = vld [vmem:[%s1453_s1 + $0x20] sm:$0xff]   ;;  %v1214_v6 = vld [vmem:[%s1453_s1 + $0x18] sm:$0xff]   ;;  %v1215_v7 = vld [vmem:[%s1453_s1 + $0x10] sm:$0xff]  }
  0x10   : > { %1107 = vmatpush3.bf16.msra.mxu0 %v1210_v0  ;;  %1162 = vmatpush3.bf16.msra.mxu1 %v1210_v0  ;;  %s1336_s27 = sadd.s32 %s891_s26, %s1469_s21  ;;  %v1216_v8 = vld [vmem:[%s1453_s1 + $0x8] sm:$0xff]   ;;  %v1217_v9 = vld [vmem:[%s1453_s1] sm:$0xff]  }
  0x11   : > { %1108 = vmatprep.subr.bf16.mxu0 %v1211_v1  ;;  %1155 = vmatprep.subr.bf16.mxu1 %v1211_v1  ;;  %s892_s28 = sshll.u32 %s1336_s27, 2  ;;  %v1380_v24 = vld [vmem:[%s1454_s2] ss:$0 sm:$0xff] }
  0x12   : > { %s1347_s6 = scalar_lea.vmem %s1452_s0, %s892_s28  ;;  %s1397_s24 = scalar_lea.vmem %s1455_s3, %s892_s28 }
  0x13   : > { %v1218_v4 = vld [vmem:[%s1347_s6] sm:$0xff]   ;;  %v1220_v10 = vld [vmem:[%s1347_s6 + $0x8] sm:$0xff]   ;;  %v1222_v12 = vld [vmem:[%s1347_s6 + $0x10] sm:$0xff]  }
  0x14   : > { %1109 = vmatpush3.bf16.msra.mxu0 %v1211_v1  ;;  %1163 = vmatpush3.bf16.msra.mxu1 %v1211_v1  ;;  %v1219_v5 = vld [vmem:[%s1347_s6 + $0x40] sm:$0xff]   ;;  %v1221_v11 = vld [vmem:[%s1347_s6 + $0x48] sm:$0xff]   ;;  %v1223_v13 = vld [vmem:[%s1347_s6 + $0x50] sm:$0xff]  }
  0x15   : > { %1110 = vmatprep.subr.bf16.mxu0 %v1212_v2  ;;  %1156 = vmatprep.subr.bf16.mxu1 %v1212_v2  ;;  %v1224_v14 = vld [vmem:[%s1347_s6 + $0x18] sm:$0xff]   ;;  %v1226_v16 = vld [vmem:[%s1347_s6 + $0x20] sm:$0xff]   ;;  %v1228_v18 = vld [vmem:[%s1347_s6 + $0x28] sm:$0xff]  }
  0x16   : > { %1122 = vmatprep.mubr.bf16.mxu0 %v1218_v4  ;;  %1138 = vmatprep.mubr.bf16.mxu1 %v1219_v5  ;;  %v1225_v15 = vld [vmem:[%s1347_s6 + $0x58] sm:$0xff]   ;;  %v1227_v17 = vld [vmem:[%s1347_s6 + $0x60] sm:$0xff]   ;;  %v1229_v19 = vld [vmem:[%s1347_s6 + $0x68] sm:$0xff]  }
  0x17   : > { %v1230_v20 = vld [vmem:[%s1347_s6 + $0x30] sm:$0xff]   ;;  %v1232_v22 = vld [vmem:[%s1347_s6 + $0x38] sm:$0xff]  }
  0x18   : > { %1111 = vmatpush3.bf16.msra.mxu0 %v1212_v2  ;;  %1164 = vmatpush3.bf16.msra.mxu1 %v1212_v2  ;;  %v1231_v21 = vld [vmem:[%s1347_s6 + $0x70] sm:$0xff]   ;;  %v1233_v23 = vld [vmem:[%s1347_s6 + $0x78] sm:$0xff]  }
  0x19   : > { %1112 = vmatprep.subr.bf16.mxu0 %v1213_v3  ;;  %1157 = vmatprep.subr.bf16.mxu1 %v1213_v3 }
  0x1c   : > { %1113 = vmatpush3.bf16.msra.mxu0 %v1213_v3  ;;  %1165 = vmatpush3.bf16.msra.mxu1 %v1213_v3 }
  0x1d   : > { %1114 = vmatprep.subr.bf16.mxu0 %v1214_v6  ;;  %1158 = vmatprep.subr.bf16.mxu1 %v1214_v6 }
  0x20   : > { %1115 = vmatpush3.bf16.msra.mxu0 %v1214_v6  ;;  %1166 = vmatpush3.bf16.msra.mxu1 %v1214_v6 }
  0x21   : > { %1116 = vmatprep.subr.bf16.mxu0 %v1215_v7  ;;  %1159 = vmatprep.subr.bf16.mxu1 %v1215_v7 }
  0x24   : > { %1117 = vmatpush3.bf16.msra.mxu0 %v1215_v7  ;;  %1167 = vmatpush3.bf16.msra.mxu1 %v1215_v7 }
  0x25   : > { %1118 = vmatprep.subr.bf16.mxu0 %v1216_v8  ;;  %1160 = vmatprep.subr.bf16.mxu1 %v1216_v8 }
  0x28   : > { %1119 = vmatpush3.bf16.msra.mxu0 %v1216_v8  ;;  %1168 = vmatpush3.bf16.msra.mxu1 %v1216_v8 }
  0x29   : > { %1120 = vmatprep.subr.bf16.mxu0 %v1217_v9  ;;  %1161 = vmatprep.subr.bf16.mxu1 %v1217_v9 }
  0x2c   : > { %1121 = vmatpush3.bf16.msra.mxu0 %v1217_v9  ;;  %1169 = vmatpush3.bf16.msra.mxu1 %v1217_v9 }
  0x2f   : > { %1123 = vmatmul.mubr.bf16.vlgmr.msra.gmra.mxu0 %v1220_v10  ;;  %1139 = vmatmul.mubr.bf16.vlgmr.msra.gmra.mxu1 %v1221_v11 }
  0x30   : > { %1126 = vmatprep.mubr.bf16.mxu0 %v1222_v12  ;;  %1142 = vmatprep.mubr.bf16.mxu1 %v1223_v13 }
  0x37   : > { %1127 = vmatmul.mubr.bf16.gmra.mxu0 %v1224_v14  ;;  %1143 = vmatmul.mubr.bf16.gmra.mxu1 %v1225_v15 }
  0x38   : > { %1130 = vmatprep.mubr.bf16.mxu0 %v1226_v16  ;;  %1146 = vmatprep.mubr.bf16.mxu1 %v1227_v17 }
  0x3f   : > { %1131 = vmatmul.mubr.bf16.gmra.mxu0 %v1228_v18  ;;  %1147 = vmatmul.mubr.bf16.gmra.mxu1 %v1229_v19 }
  0x40   : > { %1134 = vmatprep.mubr.bf16.mxu0 %v1230_v20  ;;  %1150 = vmatprep.mubr.bf16.mxu1 %v1231_v21 }
  0x47   : > { %1135 = vmatmul.mubr.bf16.gmra.mxu0 %v1232_v22  ;;  %1151 = vmatmul.mubr.bf16.gmra.mxu1 %v1233_v23 }
  0xef   : > { %v1124_v25 = vpop.f32.mrf.mxu0  ;;  %v1140_v26 = vpop.f32.mrf.mxu1 }
  0xf0   : > { %v453_v27 = vadd.f32 %v1124_v25, %v1380_v24  ;;  %v517_v28 = vadd.f32 %v1140_v26, %v1380_v24 }
  0xf1   : > { %v444_v29 = vpop.f32.mrf.mxu0  ;;  %v508_v30 = vpop.f32.mrf.mxu1 }
  0xf2   : > { %v445_v31 = vadd.f32 %v1380_v24, %v444_v29  ;;  %v509_v32 = vadd.f32 %v1380_v24, %v508_v30  ;;  %v573_v35 = vmul.f32 0.2, %v453_v27  ;;  %v589_v36 = vmul.f32 0.2, %v517_v28 }
  0xf3   : > { %v1125_v33 = vpop.f32.mrf.mxu0  ;;  %v1141_v34 = vpop.f32.mrf.mxu1 }
  0xf4   : > { %v456_v37 = vadd.f32 %v1125_v33, %v1380_v24  ;;  %v520_v38 = vadd.f32 %v1141_v34, %v1380_v24  ;;  %v571_v41 = vmul.f32 0.2, %v445_v31  ;;  %v587_v42 = vmul.f32 0.2, %v509_v32 }
  0xf5   : > { %v447_v39 = vpop.f32.mrf.mxu0  ;;  %v511_v40 = vpop.f32.mrf.mxu1  ;;  %v605_v49 = vmax.f32 %v453_v27, %v573_v35  ;;  %v621_v50 = vmax.f32 %v517_v28, %v589_v36 }
  0xf6   : > { %v448_v43 = vadd.f32 %v1380_v24, %v447_v39  ;;  %v512_v44 = vadd.f32 %v1380_v24, %v511_v40  ;;  %v574_v45 = vmul.f32 0.2, %v456_v37  ;;  %v590_v46 = vmul.f32 0.2, %v520_v38 }
  0xf7   : > { %v1128_v47 = vpop.f32.mrf.mxu0  ;;  %v1144_v48 = vpop.f32.mrf.mxu1  ;;  %v603_v59 = vmax.f32 %v445_v31, %v571_v41  ;;  %v619_v60 = vmax.f32 %v509_v32, %v587_v42 }
  0xf8   : > { %v572_v51 = vmul.f32 0.2, %v448_v43  ;;  %v588_v52 = vmul.f32 0.2, %v512_v44  ;;  %v606_v53 = vmax.f32 %v456_v37, %v574_v45  ;;  %v622_v54 = vmax.f32 %v520_v38, %v590_v46 }
  0xf9   : > { %v469_v55 = vadd.f32 %v1128_v47, %v1380_v24  ;;  %v533_v56 = vadd.f32 %v1144_v48, %v1380_v24  ;;  %v460_v57 = vpop.f32.mrf.mxu0  ;;  %v524_v58 = vpop.f32.mrf.mxu1 }
  0xfa   : > { %v604_v61 = vmax.f32 %v448_v43, %v572_v51  ;;  %v620_v62 = vmax.f32 %v512_v44, %v588_v52  ;;  %v995_v63 = vpack.c.bf16 %v606_v53, %v605_v49  ;;  %v1035_v0 = vpack.c.bf16 %v622_v54, %v621_v50 }
  0xfb   : > { %v461_v1 = vadd.f32 %v1380_v24, %v460_v57  ;;  %v525_v2 = vadd.f32 %v1380_v24, %v524_v58  ;;  %v1129_v3 = vpop.f32.mrf.mxu0  ;;  %v1145_v4 = vpop.f32.mrf.mxu1  ;;  %v577_v7 = vmul.f32 0.2, %v469_v55  ;;  %v593_v8 = vmul.f32 0.2, %v533_v56 }
  0xfc   : > { %v990_v5 = vpack.c.bf16 %v604_v61, %v603_v59  ;;  %v1030_v6 = vpack.c.bf16 %v620_v62, %v619_v60  ;;  %1067 = vst [vmem:[%s1397_s24 + $0x8] sm:$0xff] %v995_v63   ;;  %1075 = vst [vmem:[%s1397_s24 + $0x48] sm:$0xff] %v1035_v0   ;;  %v472_v9 = vadd.f32 %v1129_v3, %v1380_v24 }
  0xfd   : > { %v536_v10 = vadd.f32 %v1145_v4, %v1380_v24  ;;  %v463_v11 = vpop.f32.mrf.mxu0  ;;  %v527_v12 = vpop.f32.mrf.mxu1  ;;  %v575_v13 = vmul.f32 0.2, %v461_v1  ;;  %v591_v14 = vmul.f32 0.2, %v525_v2  ;;  %v609_v26 = vmax.f32 %v469_v55, %v577_v7 }
  0xfe   : > { %991 = vst [vmem:[%s1397_s24] sm:$0xff] %v990_v5   ;;  %1074 = vst [vmem:[%s1397_s24 + $0x40] sm:$0xff] %v1030_v6   ;;  %v464_v15 = vadd.f32 %v1380_v24, %v463_v11  ;;  %v528_v16 = vadd.f32 %v1380_v24, %v527_v12  ;;  %v578_v17 = vmul.f32 0.2, %v472_v9  ;;  %v625_v27 = vmax.f32 %v533_v56, %v593_v8 }
  0xff   : > { %v594_v18 = vmul.f32 0.2, %v536_v10  ;;  %v1132_v19 = vpop.f32.mrf.mxu0  ;;  %v1148_v20 = vpop.f32.mrf.mxu1  ;;  %v607_v32 = vmax.f32 %v461_v1, %v575_v13  ;;  %v623_v33 = vmax.f32 %v525_v2, %v591_v14 }
 0x100   : > { %v576_v21 = vmul.f32 0.2, %v464_v15  ;;  %v592_v22 = vmul.f32 0.2, %v528_v16  ;;  %v485_v23 = vadd.f32 %v1132_v19, %v1380_v24  ;;  %v549_v25 = vadd.f32 %v1148_v20, %v1380_v24 }
 0x101   : > { %v610_v28 = vmax.f32 %v472_v9, %v578_v17  ;;  %v626_v29 = vmax.f32 %v536_v10, %v594_v18  ;;  %v476_v30 = vpop.f32.mrf.mxu0  ;;  %v540_v31 = vpop.f32.mrf.mxu1 }
 0x102   : > { %v608_v34 = vmax.f32 %v464_v15, %v576_v21  ;;  %v624_v35 = vmax.f32 %v528_v16, %v592_v22  ;;  %v477_v38 = vadd.f32 %v1380_v24, %v476_v30  ;;  %v541_v39 = vadd.f32 %v1380_v24, %v540_v31 }
 0x103   : > { %v1005_v36 = vpack.c.bf16 %v610_v28, %v609_v26  ;;  %v1045_v37 = vpack.c.bf16 %v626_v29, %v625_v27  ;;  %v1133_v40 = vpop.f32.mrf.mxu0  ;;  %v1149_v41 = vpop.f32.mrf.mxu1  ;;  %v581_v44 = vmul.f32 0.2, %v485_v23  ;;  %v597_v45 = vmul.f32 0.2, %v549_v25 }
 0x104   : > { %v1000_v42 = vpack.c.bf16 %v608_v34, %v607_v32  ;;  %v1040_v43 = vpack.c.bf16 %v624_v35, %v623_v33  ;;  %v488_v46 = vadd.f32 %v1133_v40, %v1380_v24  ;;  %v552_v47 = vadd.f32 %v1149_v41, %v1380_v24 }
 0x105   : > { %1069 = vst [vmem:[%s1397_s24 + $0x18] sm:$0xff] %v1005_v36   ;;  %1077 = vst [vmem:[%s1397_s24 + $0x58] sm:$0xff] %v1045_v37   ;;  %v479_v48 = vpop.f32.mrf.mxu0  ;;  %v543_v49 = vpop.f32.mrf.mxu1  ;;  %v579_v50 = vmul.f32 0.2, %v477_v38  ;;  %v595_v51 = vmul.f32 0.2, %v541_v39  ;;  %v613_v58 = vmax.f32 %v485_v23, %v581_v44  ;;  %v629_v59 = vmax.f32 %v549_v25, %v597_v45 }
 0x106   : > { %1068 = vst [vmem:[%s1397_s24 + $0x10] sm:$0xff] %v1000_v42   ;;  %1076 = vst [vmem:[%s1397_s24 + $0x50] sm:$0xff] %v1040_v43   ;;  %v480_v52 = vadd.f32 %v1380_v24, %v479_v48  ;;  %v544_v53 = vadd.f32 %v1380_v24, %v543_v49  ;;  %v582_v54 = vmul.f32 0.2, %v488_v46  ;;  %v598_v55 = vmul.f32 0.2, %v552_v47 }
 0x107   : > { %v1136_v56 = vpop.f32.mrf.mxu0  ;;  %v1152_v57 = vpop.f32.mrf.mxu1  ;;  %v611_v4 = vmax.f32 %v477_v38, %v579_v50  ;;  %v627_v5 = vmax.f32 %v541_v39, %v595_v51 }
 0x108   : > { %v580_v60 = vmul.f32 0.2, %v480_v52  ;;  %v596_v61 = vmul.f32 0.2, %v544_v53  ;;  %v614_v62 = vmax.f32 %v488_v46, %v582_v54  ;;  %v630_v63 = vmax.f32 %v552_v47, %v598_v55 }
 0x109   : > { %v501_v0 = vadd.f32 %v1136_v56, %v1380_v24  ;;  %v565_v1 = vadd.f32 %v1152_v57, %v1380_v24  ;;  %v492_v2 = vpop.f32.mrf.mxu0  ;;  %v556_v3 = vpop.f32.mrf.mxu1 }
 0x10a   : > { %v612_v6 = vmax.f32 %v480_v52, %v580_v60  ;;  %v628_v7 = vmax.f32 %v544_v53, %v596_v61  ;;  %v1015_v8 = vpack.c.bf16 %v614_v62, %v613_v58  ;;  %v1055_v9 = vpack.c.bf16 %v630_v63, %v629_v59 }
 0x10b   : > { %v493_v10 = vadd.f32 %v1380_v24, %v492_v2  ;;  %v557_v11 = vadd.f32 %v1380_v24, %v556_v3  ;;  %v1137_v12 = vpop.f32.mrf.mxu0  ;;  %v1153_v13 = vpop.f32.mrf.mxu1  ;;  %v585_v16 = vmul.f32 0.2, %v501_v0  ;;  %v601_v17 = vmul.f32 0.2, %v565_v1 }
 0x10c   : > { %v1010_v14 = vpack.c.bf16 %v612_v6, %v611_v4  ;;  %v1050_v15 = vpack.c.bf16 %v628_v7, %v627_v5  ;;  %1071 = vst [vmem:[%s1397_s24 + $0x28] sm:$0xff] %v1015_v8   ;;  %1079 = vst [vmem:[%s1397_s24 + $0x68] sm:$0xff] %v1055_v9   ;;  %v504_v18 = vadd.f32 %v1137_v12, %v1380_v24 }
 0x10d   : > { %v568_v19 = vadd.f32 %v1153_v13, %v1380_v24  ;;  %v495_v20 = vpop.f32.mrf.mxu0  ;;  %v559_v21 = vpop.f32.mrf.mxu1  ;;  %v583_v22 = vmul.f32 0.2, %v493_v10  ;;  %v599_v23 = vmul.f32 0.2, %v557_v11  ;;  %v617_v31 = vmax.f32 %v501_v0, %v585_v16 }
 0x10e   : > { %1070 = vst [vmem:[%s1397_s24 + $0x20] sm:$0xff] %v1010_v14   ;;  %1078 = vst [vmem:[%s1397_s24 + $0x60] sm:$0xff] %v1050_v15   ;;  %v496_v25 = vadd.f32 %v1380_v24, %v495_v20  ;;  %v560_v26 = vadd.f32 %v1380_v24, %v559_v21  ;;  %v586_v27 = vmul.f32 0.2, %v504_v18  ;;  %v633_v32 = vmax.f32 %v565_v1, %v601_v17 }
 0x10f   : > { %v602_v28 = vmul.f32 0.2, %v568_v19  ;;  %v615_v35 = vmax.f32 %v493_v10, %v583_v22  ;;  %v631_v36 = vmax.f32 %v557_v11, %v599_v23 }
 0x110   : > { %v584_v29 = vmul.f32 0.2, %v496_v25  ;;  %v600_v30 = vmul.f32 0.2, %v560_v26  ;;  %v618_v33 = vmax.f32 %v504_v18, %v586_v27 }
 0x111   : > { %v634_v34 = vmax.f32 %v568_v19, %v602_v28 }
 0x112   : > { %v616_v37 = vmax.f32 %v496_v25, %v584_v29  ;;  %v632_v38 = vmax.f32 %v560_v26, %v600_v30  ;;  %v1025_v39 = vpack.c.bf16 %v618_v33, %v617_v31 }
 0x113   : > { %v1065_v40 = vpack.c.bf16 %v634_v34, %v633_v32 }
 0x114   : > { %v1020_v41 = vpack.c.bf16 %v616_v37, %v615_v35  ;;  %v1060_v24 = vpack.c.bf16 %v632_v38, %v631_v36  ;;  %1073 = vst [vmem:[%s1397_s24 + $0x38] sm:$0xff] %v1025_v39  }
 0x115   : > { %1081 = vst [vmem:[%s1397_s24 + $0x78] sm:$0xff] %v1065_v40  }
 0x116   : > { %1072 = vst [vmem:[%s1397_s24 + $0x30] sm:$0xff] %v1020_v41   ;;  %1080 = vst [vmem:[%s1397_s24 + $0x70] sm:$0xff] %v1060_v24  }
 0x117 PF: > { %s13_s16 = sadd.s32 1, %s1272_s16   ;;  %s1456_s12 = smov %s1264_s14 }
 0x118   : > { %p10_p7 = scmp.ge.s32.totalorder %s13_s16, 10   ;;  %s1457_s13 = smov %s1268_s15 }
 0x119   : > { %s1458_s14 = smov %s1461_s17  ;;  %s1459_s15 = smov %s1465_s18 }
 0x11a   :  { %12 = sbr.rel (!%p10_p7) target bundleno = 3 (0x3), region = 62 }

// kernel: discriminator_forward.6
= control target key start
LH: loop header
LB: loop body
LE: loop exit
PB: predicated region body
PF: predicated region fallthrough
CT: control target
= control target key end

     0   :  { %s1406_s15 = smov 0   ;;  %s1408_s16 = smov 0   ;;  %s1614_s0 = inlined_call_operand.vmem [shape: bf16[2,256,128], index: 0, kind: input, shape index: {}]   ;;  %s1615_s1 = inlined_call_operand.vmem [shape: bf16[128,128], index: 1, kind: input, shape index: {}]   ;;  %s1616_s2 = inlined_call_operand.vmem [shape: bf16[2,256,128], index: 2, kind: output, shape index: {0}]   ;;  %s1617_s3 = inlined_call_operand.vmem [shape: f32[2,1,128], index: 3, kind: output, shape index: {1}]   ;;  %s1618_s4 = inlined_call_operand.vmem [shape: f32[2,1,128], index: 4, kind: output, shape index: {2}]  }
   0x1   :  { %s1410_s17 = smov 0  }
   0x2 LB: > { %s27_s18 = sadd.s32 1, %s1374_s16  ;;  %p1027_p0 = scmp.ge.s32.totalorder %s1378_s17, 1  ;;  %s1378_s17 = sphi %s1410_s17, %s15_s17   ;;  %s1374_s16 = sphi %s1408_s16, %s1620_s16   ;;  %s1370_s15 = sphi %s1406_s15, %s1619_s15  }
   0x3   : > { %p29_p1 = scmp.ge.s32.totalorder %s27_s18, 2  ;;  %p188_p2 = scmp.lt.s32.totalorder %s1378_s17, 3 }
   0x5   : > { %s1622_s18 = smov (%p29_p1, %s27_s18), 0  ;;  %p189_p3 = pnand %p1027_p0, %p188_p2 }
   0x6   : > { %p229_p4 = scmp.lt.s32.totalorder (!%p189_p3), %s1370_s15, 1 }
   0x7   : > { %192 = sbr.rel (%p189_p3) target bundleno = 323 (0x143), region = 28 }
   0xc   : > { %v1332_v0 = vld [vmem:[%s1615_s1 + $0x38] sm:$0xff]   ;;  %v1333_v1 = vld [vmem:[%s1615_s1 + $0x30] sm:$0xff]   ;;  %s1624_s15 = smov (!%p229_p4, %s1370_s15), 1  ;;  %v1334_v2 = vld [vmem:[%s1615_s1 + $0x28] sm:$0xff]   ;;  %v1380_v24 = vmov 0.0  }
   0xd   : > { %1243 = vmatprep.subr.bf16.mxu0 %v1332_v0  ;;  %1291 = vmatprep.subr.bf16.mxu1 %v1332_v0  ;;  %s1090_s25 = sshll.u32 %s1624_s15, 7  ;;  %v1335_v3 = vld [vmem:[%s1615_s1 + $0x20] sm:$0xff]   ;;  %v1336_v5 = vld [vmem:[%s1615_s1 + $0x18] sm:$0xff]   ;;  %v1337_v6 = vld [vmem:[%s1615_s1 + $0x10] sm:$0xff]   ;;  %s1478_s19 = scalar_lea.vmem %s1617_s3, %s1624_s15 }
   0xe   : > { %1244 = vmatpush3.bf16.msra.mxu0 %v1332_v0  ;;  %1299 = vmatpush3.bf16.msra.mxu1 %v1332_v0  ;;  %s1441_s28 = scalar_lea.vmem %s1614_s0, %s1090_s25  ;;  %v1338_v8 = vld [vmem:[%s1615_s1 + $0x8] sm:$0xff]   ;;  %v1339_v9 = vld [vmem:[%s1615_s1] sm:$0xff]   ;;  %s1484_s22 = scalar_lea.vmem %s1618_s4, %s1624_s15  ;;  %612 = vst [vmem:[%s1478_s19] sm:$0x1] %v1380_v24 }
   0xf   : > { %1245 = vmatprep.subr.bf16.mxu0 %v1333_v1  ;;  %1292 = vmatprep.subr.bf16.mxu1 %v1333_v1  ;;  %v1340_v4 = vld [vmem:[%s1441_s28] sm:$0xff]   ;;  %v1341_v10 = vld [vmem:[%s1441_s28 + $0x8] sm:$0xff]   ;;  %v1342_v12 = vld [vmem:[%s1441_s28 + $0x10] sm:$0xff]   ;;  %613 = vst [vmem:[%s1484_s22] sm:$0x1] %v1380_v24  ;;  %s1497_s26 = scalar_lea.vmem %s1616_s2, %s1090_s25 }
  0x10   : > { %1259 = vmatprep.mubr.bf16.mxu0 %v1340_v4  ;;  %v1348_v7 = vld [vmem:[%s1441_s28 + $0x40] sm:$0xff]   ;;  %v1349_v11 = vld [vmem:[%s1441_s28 + $0x48] sm:$0xff]   ;;  %v1350_v13 = vld [vmem:[%s1441_s28 + $0x50] sm:$0xff]  }
  0x11   : > { %1275 = vmatprep.mubr.bf16.mxu1 %v1348_v7  ;;  %v1343_v14 = vld [vmem:[%s1441_s28 + $0x18] sm:$0xff]   ;;  %v1344_v16 = vld [vmem:[%s1441_s28 + $0x20] sm:$0xff]   ;;  %v1345_v18 = vld [vmem:[%s1441_s28 + $0x28] sm:$0xff]  }
  0x12   : > { %1246 = vmatpush3.bf16.msra.mxu0 %v1333_v1  ;;  %1300 = vmatpush3.bf16.msra.mxu1 %v1333_v1  ;;  %v1351_v15 = vld [vmem:[%s1441_s28 + $0x58] sm:$0xff]   ;;  %v1352_v17 = vld [vmem:[%s1441_s28 + $0x60] sm:$0xff]   ;;  %v1353_v19 = vld [vmem:[%s1441_s28 + $0x68] sm:$0xff]  }
  0x13   : > { %1247 = vmatprep.subr.bf16.mxu0 %v1334_v2  ;;  %1293 = vmatprep.subr.bf16.mxu1 %v1334_v2  ;;  %v1346_v20 = vld [vmem:[%s1441_s28 + $0x30] sm:$0xff]   ;;  %v1347_v22 = vld [vmem:[%s1441_s28 + $0x38] sm:$0xff]  }
  0x14   : > { %v1354_v21 = vld [vmem:[%s1441_s28 + $0x70] sm:$0xff]   ;;  %v1355_v23 = vld [vmem:[%s1441_s28 + $0x78] sm:$0xff]  }
  0x16   : > { %1248 = vmatpush3.bf16.msra.mxu0 %v1334_v2  ;;  %1301 = vmatpush3.bf16.msra.mxu1 %v1334_v2 }
  0x17   : > { %1249 = vmatprep.subr.bf16.mxu0 %v1335_v3  ;;  %1294 = vmatprep.subr.bf16.mxu1 %v1335_v3 }
  0x1a   : > { %1250 = vmatpush3.bf16.msra.mxu0 %v1335_v3  ;;  %1302 = vmatpush3.bf16.msra.mxu1 %v1335_v3 }
  0x1b   : > { %1251 = vmatprep.subr.bf16.mxu0 %v1336_v5  ;;  %1295 = vmatprep.subr.bf16.mxu1 %v1336_v5 }
  0x1e   : > { %1252 = vmatpush3.bf16.msra.mxu0 %v1336_v5  ;;  %1303 = vmatpush3.bf16.msra.mxu1 %v1336_v5 }
  0x1f   : > { %1253 = vmatprep.subr.bf16.mxu0 %v1337_v6  ;;  %1296 = vmatprep.subr.bf16.mxu1 %v1337_v6 }
  0x22   : > { %1254 = vmatpush3.bf16.msra.mxu0 %v1337_v6  ;;  %1304 = vmatpush3.bf16.msra.mxu1 %v1337_v6 }
  0x23   : > { %1255 = vmatprep.subr.bf16.mxu0 %v1338_v8  ;;  %1297 = vmatprep.subr.bf16.mxu1 %v1338_v8 }
  0x26   : > { %1256 = vmatpush3.bf16.msra.mxu0 %v1338_v8  ;;  %1305 = vmatpush3.bf16.msra.mxu1 %v1338_v8 }
  0x27   : > { %1257 = vmatprep.subr.bf16.mxu0 %v1339_v9  ;;  %1298 = vmatprep.subr.bf16.mxu1 %v1339_v9 }
  0x2a   : > { %1258 = vmatpush3.bf16.msra.mxu0 %v1339_v9  ;;  %1306 = vmatpush3.bf16.msra.mxu1 %v1339_v9 }
  0x2d   : > { %1260 = vmatmul.mubr.bf16.vlgmr.msra.gmra.mxu0 %v1341_v10  ;;  %1276 = vmatmul.mubr.bf16.vlgmr.msra.gmra.mxu1 %v1349_v11 }
  0x2e   : > { %1263 = vmatprep.mubr.bf16.mxu0 %v1342_v12  ;;  %1279 = vmatprep.mubr.bf16.mxu1 %v1350_v13 }
  0x35   : > { %1264 = vmatmul.mubr.bf16.gmra.mxu0 %v1343_v14  ;;  %1280 = vmatmul.mubr.bf16.gmra.mxu1 %v1351_v15 }
  0x36   : > { %1267 = vmatprep.mubr.bf16.mxu0 %v1344_v16  ;;  %1283 = vmatprep.mubr.bf16.mxu1 %v1352_v17 }
  0x3d   : > { %1268 = vmatmul.mubr.bf16.gmra.mxu0 %v1345_v18  ;;  %1284 = vmatmul.mubr.bf16.gmra.mxu1 %v1353_v19 }
  0x3e   : > { %1271 = vmatprep.mubr.bf16.mxu0 %v1346_v20  ;;  %1287 = vmatprep.mubr.bf16.mxu1 %v1354_v21 }
  0x45   : > { %1272 = vmatmul.mubr.bf16.gmra.mxu0 %v1347_v22  ;;  %1288 = vmatmul.mubr.bf16.gmra.mxu1 %v1355_v23 }
  0xed   : > { %v1261_v25 = vpop.f32.mrf.mxu0  ;;  %v1488_v26 = vpop.f32.mrf.mxu1 }
  0xee   : > { %v657_v42 = vmul.f32 %v1261_v25, %v1261_v25 }
  0xef   : > { %v481_v27 = vpop.f32.mrf.mxu0  ;;  %v1490_v28 = vpop.f32.mrf.mxu1 }
  0xf0   : > { %v655_v35 = vmul.f32 %v481_v27, %v481_v27 }
  0xf1   : > { %v1262_v29 = vpop.f32.mrf.mxu0  ;;  %v1499_v30 = vpop.f32.mrf.mxu1 }
  0xf2   : > { %v1132_v31 = vpack.c.bf16 %v1262_v29, %v1261_v25  ;;  %v1172_v32 = vpack.c.bf16 %v1499_v30, %v1488_v26  ;;  %v658_v47 = vmul.f32 %v1262_v29, %v1262_v29 }
  0xf3   : > { %v484_v33 = vpop.f32.mrf.mxu0  ;;  %v1503_v34 = vpop.f32.mrf.mxu1 }
  0xf4   : > { %1204 = vst [vmem:[%s1497_s26 + $0x8] sm:$0xff] %v1132_v31   ;;  %v615_v36 = vadd.f32 %v484_v33, %v481_v27  ;;  %v656_v37 = vmul.f32 %v484_v33, %v484_v33  ;;  %v1127_v38 = vpack.c.bf16 %v484_v33, %v481_v27  ;;  %1212 = vst [vmem:[%s1497_s26 + $0x48] sm:$0xff] %v1172_v32  }
  0xf5   : > { %v1265_v39 = vpop.f32.mrf.mxu0  ;;  %v1167_v40 = vpack.c.bf16 %v1503_v34, %v1490_v28  ;;  %v1509_v41 = vpop.f32.mrf.mxu1 }
  0xf6   : > { %v616_v43 = vadd.f32 %v1261_v25, %v615_v36  ;;  %v687_v44 = vadd.f32 %v656_v37, %v655_v35  ;;  %1128 = vst [vmem:[%s1497_s26] sm:$0xff] %v1127_v38   ;;  %v661_v2 = vmul.f32 %v1265_v39, %v1265_v39 }
  0xf7   : > { %v497_v45 = vpop.f32.mrf.mxu0  ;;  %1211 = vst [vmem:[%s1497_s26 + $0x40] sm:$0xff] %v1167_v40   ;;  %v1513_v46 = vpop.f32.mrf.mxu1 }
  0xf8   : > { %v688_v48 = vadd.f32 %v687_v44, %v657_v42  ;;  %v617_v49 = vadd.f32 %v1262_v29, %v616_v43  ;;  %v659_v53 = vmul.f32 %v497_v45, %v497_v45 }
  0xf9   : > { %v1266_v50 = vpop.f32.mrf.mxu0  ;;  %v1515_v51 = vpop.f32.mrf.mxu1 }
  0xfa   : > { %v618_v52 = vadd.f32 %v617_v49, %v497_v45  ;;  %v689_v54 = vadd.f32 %v688_v48, %v658_v47  ;;  %v1142_v55 = vpack.c.bf16 %v1266_v50, %v1265_v39  ;;  %v1182_v57 = vpack.c.bf16 %v1515_v51, %v1509_v41 }
  0xfb   : > { %v500_v56 = vpop.f32.mrf.mxu0  ;;  %v1519_v58 = vpop.f32.mrf.mxu1  ;;  %v662_v7 = vmul.f32 %v1266_v50, %v1266_v50 }
  0xfc   : > { %v690_v59 = vadd.f32 %v689_v54, %v659_v53  ;;  %1206 = vst [vmem:[%s1497_s26 + $0x18] sm:$0xff] %v1142_v55   ;;  %v619_v60 = vadd.f32 %v618_v52, %v500_v56  ;;  %v660_v61 = vmul.f32 %v500_v56, %v500_v56  ;;  %v1137_v62 = vpack.c.bf16 %v500_v56, %v497_v45 }
  0xfd   : > { %v1269_v63 = vpop.f32.mrf.mxu0  ;;  %1214 = vst [vmem:[%s1497_s26 + $0x58] sm:$0xff] %v1182_v57   ;;  %v1177_v0 = vpack.c.bf16 %v1519_v58, %v1513_v46  ;;  %v1525_v1 = vpop.f32.mrf.mxu1 }
  0xfe   : > { %v620_v3 = vadd.f32 %v1265_v39, %v619_v60  ;;  %v691_v4 = vadd.f32 %v690_v59, %v660_v61  ;;  %1205 = vst [vmem:[%s1497_s26 + $0x10] sm:$0xff] %v1137_v62   ;;  %v665_v27 = vmul.f32 %v1269_v63, %v1269_v63  ;;  %v671_v62 = vmul.f32 %v1490_v28, %v1490_v28 }
  0xff   : > { %v513_v5 = vpop.f32.mrf.mxu0  ;;  %1213 = vst [vmem:[%s1497_s26 + $0x50] sm:$0xff] %v1177_v0   ;;  %v1529_v6 = vpop.f32.mrf.mxu1 }
 0x100   : > { %v692_v8 = vadd.f32 %v691_v4, %v661_v2  ;;  %v621_v9 = vadd.f32 %v1266_v50, %v620_v3  ;;  %v663_v13 = vmul.f32 %v513_v5, %v513_v5  ;;  %v672_v3 = vmul.f32 %v1503_v34, %v1503_v34 }
 0x101   : > { %v1270_v10 = vpop.f32.mrf.mxu0  ;;  %v1531_v11 = vpop.f32.mrf.mxu1 }
 0x102   : > { %v622_v12 = vadd.f32 %v621_v9, %v513_v5  ;;  %v693_v14 = vadd.f32 %v692_v8, %v662_v7  ;;  %v1152_v15 = vpack.c.bf16 %v1270_v10, %v1269_v63  ;;  %v1192_v17 = vpack.c.bf16 %v1531_v11, %v1525_v1 }
 0x103   : > { %v516_v16 = vpop.f32.mrf.mxu0  ;;  %v1535_v18 = vpop.f32.mrf.mxu1  ;;  %v666_v35 = vmul.f32 %v1270_v10, %v1270_v10  ;;  %v674_v9 = vmul.f32 %v1499_v30, %v1499_v30 }
 0x104   : > { %v694_v19 = vadd.f32 %v693_v14, %v663_v13  ;;  %1208 = vst [vmem:[%s1497_s26 + $0x28] sm:$0xff] %v1152_v15   ;;  %v623_v20 = vadd.f32 %v622_v12, %v516_v16  ;;  %v664_v21 = vmul.f32 %v516_v16, %v516_v16  ;;  %v1147_v22 = vpack.c.bf16 %v516_v16, %v513_v5 }
 0x105   : > { %v1273_v23 = vpop.f32.mrf.mxu0  ;;  %1216 = vst [vmem:[%s1497_s26 + $0x68] sm:$0xff] %v1192_v17   ;;  %v1187_v24 = vpack.c.bf16 %v1535_v18, %v1529_v6  ;;  %v1541_v25 = vpop.f32.mrf.mxu1  ;;  %v673_v5 = vmul.f32 %v1488_v26, %v1488_v26  ;;  %v675_v13 = vmul.f32 %v1513_v46, %v1513_v46  ;;  %v676_v16 = vmul.f32 %v1519_v58, %v1519_v58 }
 0x106   : > { %v624_v29 = vadd.f32 %v1269_v63, %v623_v20  ;;  %v695_v31 = vadd.f32 %v694_v19, %v664_v21  ;;  %1207 = vst [vmem:[%s1497_s26 + $0x20] sm:$0xff] %v1147_v22   ;;  %v669_v55 = vmul.f32 %v1273_v23, %v1273_v23  ;;  %v679_v22 = vmul.f32 %v1529_v6, %v1529_v6 }
 0x107   : > { %v529_v32 = vpop.f32.mrf.mxu0  ;;  %1215 = vst [vmem:[%s1497_s26 + $0x60] sm:$0xff] %v1187_v24   ;;  %v1545_v33 = vpop.f32.mrf.mxu1 }
 0x108   : > { %v696_v36 = vadd.f32 %v695_v31, %v665_v27  ;;  %v625_v37 = vadd.f32 %v1270_v10, %v624_v29  ;;  %v667_v42 = vmul.f32 %v529_v32, %v529_v32  ;;  %v680_v27 = vmul.f32 %v1535_v18, %v1535_v18 }
 0x109   : > { %v1274_v38 = vpop.f32.mrf.mxu0  ;;  %v1547_v39 = vpop.f32.mrf.mxu1 }
 0x10a   : > { %v626_v40 = vadd.f32 %v625_v37, %v529_v32  ;;  %v697_v43 = vadd.f32 %v696_v36, %v666_v35  ;;  %v1162_v44 = vpack.c.bf16 %v1274_v38, %v1273_v23  ;;  %v1202_v47 = vpack.c.bf16 %v1547_v39, %v1541_v25 }
 0x10b   : > { %v532_v45 = vpop.f32.mrf.mxu0  ;;  %v596_v48 = vpop.f32.mrf.mxu1  ;;  %v670_v59 = vmul.f32 %v1274_v38, %v1274_v38  ;;  %v683_v36 = vmul.f32 %v1545_v33, %v1545_v33 }
 0x10c   : > { %v698_v49 = vadd.f32 %v697_v43, %v667_v42  ;;  %1210 = vst [vmem:[%s1497_s26 + $0x38] sm:$0xff] %v1162_v44   ;;  %v627_v50 = vadd.f32 %v626_v40, %v532_v45  ;;  %v668_v52 = vmul.f32 %v532_v45, %v532_v45  ;;  %v1157_v53 = vpack.c.bf16 %v532_v45, %v529_v32 }
 0x10d   : > { %1218 = vst [vmem:[%s1497_s26 + $0x78] sm:$0xff] %v1202_v47   ;;  %v1197_v54 = vpack.c.bf16 %v596_v48, %v1545_v33  ;;  %v684_v40 = vmul.f32 %v596_v48, %v596_v48  ;;  %v685_v42 = vmul.f32 %v1541_v25, %v1541_v25  ;;  %v686_v44 = vmul.f32 %v1547_v39, %v1547_v39 }
 0x10e   : > { %v628_v56 = vadd.f32 %v1273_v23, %v627_v50  ;;  %v699_v57 = vadd.f32 %v698_v49, %v668_v52  ;;  %1209 = vst [vmem:[%s1497_s26 + $0x30] sm:$0xff] %v1157_v53  }
 0x10f   : > { %1217 = vst [vmem:[%s1497_s26 + $0x70] sm:$0xff] %v1197_v54  }
 0x110   : > { %v629_v60 = vadd.f32 %v1274_v38, %v628_v56  ;;  %v700_v61 = vadd.f32 %v699_v57, %v669_v55  ;;  %v614_v56 = vld [vmem:[%s1478_s19] sm:$0x1] }
 0x112   : > { %v701_v63 = vadd.f32 %v700_v61, %v670_v59  ;;  %v630_v0 = vadd.f32 %v629_v60, %v1490_v28  ;;  %v654_v60 = vld [vmem:[%s1484_s22] sm:$0x1] }
 0x114   : > { %v631_v2 = vadd.f32 %v630_v0, %v1503_v34  ;;  %v702_v4 = vadd.f32 %v701_v63, %v671_v62 }
 0x116   : > { %v632_v7 = vadd.f32 %v1488_v26, %v631_v2  ;;  %v703_v8 = vadd.f32 %v702_v4, %v672_v3  ;;  %v677_v26 = vmul.f32 %v1509_v41, %v1509_v41 }
 0x118   : > { %v704_v10 = vadd.f32 %v703_v8, %v673_v5  ;;  %v633_v12 = vadd.f32 %v1499_v30, %v632_v7  ;;  %v678_v30 = vmul.f32 %v1515_v51, %v1515_v51 }
 0x11a   : > { %v634_v28 = vadd.f32 %v633_v12, %v1513_v46  ;;  %v705_v14 = vadd.f32 %v704_v10, %v674_v9 }
 0x11c   : > { %v706_v34 = vadd.f32 %v705_v14, %v675_v13  ;;  %v635_v15 = vadd.f32 %v634_v28, %v1519_v58 }
 0x11e   : > { %v636_v17 = vadd.f32 %v1509_v41, %v635_v15  ;;  %v707_v19 = vadd.f32 %v706_v34, %v676_v16  ;;  %v681_v41 = vmul.f32 %v1525_v1, %v1525_v1 }
 0x120   : > { %v708_v20 = vadd.f32 %v707_v19, %v677_v26  ;;  %v637_v21 = vadd.f32 %v1515_v51, %v636_v17  ;;  %v682_v51 = vmul.f32 %v1531_v11, %v1531_v11 }
 0x122   : > { %v638_v46 = vadd.f32 %v637_v21, %v1529_v6  ;;  %v709_v23 = vadd.f32 %v708_v20, %v678_v30 }
 0x124   : > { %v710_v24 = vadd.f32 %v709_v23, %v679_v22  ;;  %v639_v58 = vadd.f32 %v638_v46, %v1535_v18 }
 0x126   : > { %v640_v29 = vadd.f32 %v1525_v1, %v639_v58  ;;  %v711_v31 = vadd.f32 %v710_v24, %v680_v27 }
 0x128   : > { %v712_v32 = vadd.f32 %v711_v31, %v681_v41  ;;  %v641_v35 = vadd.f32 %v1531_v11, %v640_v29 }
 0x12a   : > { %v642_v6 = vadd.f32 %v641_v35, %v1545_v33  ;;  %v713_v37 = vadd.f32 %v712_v32, %v682_v51 }
 0x12c   : > { %v714_v38 = vadd.f32 %v713_v37, %v683_v36  ;;  %v643_v18 = vadd.f32 %v642_v6, %v596_v48 }
 0x12e   : > { %v644_v1 = vadd.f32 %v1541_v25, %v643_v18  ;;  %v715_v43 = vadd.f32 %v714_v38, %v684_v40 }
 0x130   : > { %v645_v11 = vadd.f32 %v1547_v39, %v644_v1  ;;  %v716_v45 = vadd.f32 %v715_v43, %v685_v42 }
 0x132   : > { %v646_v47 = vrot.slane %v645_v11, 4  ;;  %v717_v33 = vadd.f32 %v716_v45, %v686_v44 }
 0x134   : > { %v647_v49 = vadd.f32 %v646_v47, %v645_v11  ;;  %v718_v48 = vrot.slane %v717_v33, 4 }
 0x136   : > { %v648_v50 = vrot.slane %v647_v49, 2  ;;  %v719_v52 = vadd.f32 %v718_v48, %v717_v33 }
 0x138   : > { %v649_v53 = vadd.f32 %v648_v50, %v647_v49  ;;  %v720_v54 = vrot.slane %v719_v52, 2 }
 0x13a   : > { %v650_v55 = vrot.slane %v649_v53, 1  ;;  %v721_v25 = vadd.f32 %v720_v54, %v719_v52 }
 0x13c   : > { %v651_v57 = vadd.f32 %v650_v55, %v649_v53  ;;  %v722_v59 = vrot.slane %v721_v25, 1 }
 0x13e   : > { %v652_v61 = vadd.f32 %v651_v57, %v614_v56  ;;  %v723_v62 = vadd.f32 %v722_v59, %v721_v25 }
 0x140   : > { %653 = vst [vmem:[%s1478_s19] sm:$0x1] %v652_v61  ;;  %v724_v39 = vadd.f32 %v723_v62, %v654_v60 }
 0x142   : > { %725 = vst [vmem:[%s1484_s22] sm:$0x1] %v724_v39 }
 0x143 PF: > { %s15_s17 = sadd.s32 1, %s1378_s17   ;;  %s1619_s15 = smov %s1374_s16 }
 0x144   : > { %p12_p5 = scmp.ge.s32.totalorder %s15_s17, 4   ;;  %s1620_s16 = smov %s1622_s18 }
 0x146   :  { %14 = sbr.rel (!%p12_p5) target bundleno = 2 (0x2), region = 86 }

// kernel: discriminator_forward.7
= control target key start
LH: loop header
LB: loop body
LE: loop exit
PB: predicated region body
PF: predicated region fallthrough
CT: control target
= control target key end

     0   :  { %s842_s15 = smov 0   ;;  %s844_s16 = smov 0   ;;  %s930_s0 = inlined_call_operand.vmem [shape: bf16[2,64,128], index: 0, kind: input, shape index: {}]   ;;  %s931_s1 = inlined_call_operand.vmem [shape: bf16[128,128], index: 1, kind: input, shape index: {}]   ;;  %s932_s2 = inlined_call_operand.vmem [shape: bf16[2,64,128], index: 2, kind: output, shape index: {0}]   ;;  %s933_s3 = inlined_call_operand.vmem [shape: f32[2,1,128], index: 3, kind: output, shape index: {1}]   ;;  %s934_s4 = inlined_call_operand.vmem [shape: f32[2,1,128], index: 4, kind: output, shape index: {2}]  }
   0x1   :  { %s846_s17 = smov 0  }
   0x2 LB: > { %s27_s18 = sadd.s32 1, %s810_s16  ;;  %p643_p0 = scmp.ge.s32.totalorder %s814_s17, 1  ;;  %s814_s17 = sphi %s846_s17, %s15_s17   ;;  %s810_s16 = sphi %s844_s16, %s936_s16   ;;  %s806_s15 = sphi %s842_s15, %s935_s15  }
   0x3   : > { %p29_p1 = scmp.ge.s32.totalorder %s27_s18, 2  ;;  %p188_p2 = scmp.lt.s32.totalorder %s814_s17, 3 }
   0x5   : > { %s938_s18 = smov (%p29_p1, %s27_s18), 0  ;;  %p189_p3 = pnand %p643_p0, %p188_p2 }
   0x6   : > { %p229_p4 = scmp.lt.s32.totalorder (!%p189_p3), %s806_s15, 1 }
   0x7   : > { %192 = sbr.rel (%p189_p3) target bundleno = 275 (0x113), region = 28 }
   0xc   : > { %v780_v0 = vld [vmem:[%s931_s1 + $0x38] sm:$0xff]   ;;  %v781_v1 = vld [vmem:[%s931_s1 + $0x30] sm:$0xff]   ;;  %s940_s15 = smov (!%p229_p4, %s806_s15), 1  ;;  %v782_v2 = vld [vmem:[%s931_s1 + $0x28] sm:$0xff]   ;;  %v816_v12 = vmov 0.0  }
   0xd   : > { %715 = vmatprep.subr.bf16.mxu0 %v780_v0  ;;  %739 = vmatprep.subr.bf16.mxu1 %v780_v0  ;;  %s670_s25 = sshll.u32 %s940_s15, 5  ;;  %v783_v3 = vld [vmem:[%s931_s1 + $0x20] sm:$0xff]   ;;  %v784_v6 = vld [vmem:[%s931_s1 + $0x18] sm:$0xff]   ;;  %v785_v7 = vld [vmem:[%s931_s1 + $0x10] sm:$0xff]   ;;  %s902_s19 = scalar_lea.vmem %s933_s3, %s940_s15 }
   0xe   : > { %716 = vmatpush3.bf16.msra.mxu0 %v780_v0  ;;  %747 = vmatpush3.bf16.msra.mxu1 %v780_v0  ;;  %s877_s28 = scalar_lea.vmem %s930_s0, %s670_s25  ;;  %v786_v8 = vld [vmem:[%s931_s1 + $0x8] sm:$0xff]   ;;  %v787_v9 = vld [vmem:[%s931_s1] sm:$0xff]   ;;  %s908_s22 = scalar_lea.vmem %s934_s4, %s940_s15  ;;  %420 = vst [vmem:[%s902_s19] sm:$0x1] %v816_v12 }
   0xf   : > { %717 = vmatprep.subr.bf16.mxu0 %v781_v1  ;;  %740 = vmatprep.subr.bf16.mxu1 %v781_v1  ;;  %v788_v4 = vld [vmem:[%s877_s28] sm:$0xff]   ;;  %v790_v5 = vld [vmem:[%s877_s28 + $0x10] sm:$0xff]   ;;  %v789_v10 = vld [vmem:[%s877_s28 + $0x8] sm:$0xff]   ;;  %421 = vst [vmem:[%s908_s22] sm:$0x1] %v816_v12  ;;  %s246_s26 = scalar_lea.vmem %s932_s2, %s670_s25 }
  0x10   : > { %731 = vmatprep.mubr.bf16.mxu0 %v788_v4  ;;  %735 = vmatprep.mubr.bf16.mxu1 %v790_v5  ;;  %v791_v11 = vld [vmem:[%s877_s28 + $0x18] sm:$0xff]  }
  0x12   : > { %718 = vmatpush3.bf16.msra.mxu0 %v781_v1  ;;  %748 = vmatpush3.bf16.msra.mxu1 %v781_v1 }
  0x13   : > { %719 = vmatprep.subr.bf16.mxu0 %v782_v2  ;;  %741 = vmatprep.subr.bf16.mxu1 %v782_v2 }
  0x15   : > { %v422_v56 = vld [vmem:[%s902_s19] sm:$0x1] }
  0x16   : > { %720 = vmatpush3.bf16.msra.mxu0 %v782_v2  ;;  %749 = vmatpush3.bf16.msra.mxu1 %v782_v2  ;;  %v438_v59 = vld [vmem:[%s908_s22] sm:$0x1] }
  0x17   : > { %721 = vmatprep.subr.bf16.mxu0 %v783_v3  ;;  %742 = vmatprep.subr.bf16.mxu1 %v783_v3 }
  0x1a   : > { %722 = vmatpush3.bf16.msra.mxu0 %v783_v3  ;;  %750 = vmatpush3.bf16.msra.mxu1 %v783_v3 }
  0x1b   : > { %723 = vmatprep.subr.bf16.mxu0 %v784_v6  ;;  %743 = vmatprep.subr.bf16.mxu1 %v784_v6 }
  0x1e   : > { %724 = vmatpush3.bf16.msra.mxu0 %v784_v6  ;;  %751 = vmatpush3.bf16.msra.mxu1 %v784_v6 }
  0x1f   : > { %725 = vmatprep.subr.bf16.mxu0 %v785_v7  ;;  %744 = vmatprep.subr.bf16.mxu1 %v785_v7 }
  0x22   : > { %726 = vmatpush3.bf16.msra.mxu0 %v785_v7  ;;  %752 = vmatpush3.bf16.msra.mxu1 %v785_v7 }
  0x23   : > { %727 = vmatprep.subr.bf16.mxu0 %v786_v8  ;;  %745 = vmatprep.subr.bf16.mxu1 %v786_v8 }
  0x26   : > { %728 = vmatpush3.bf16.msra.mxu0 %v786_v8  ;;  %753 = vmatpush3.bf16.msra.mxu1 %v786_v8 }
  0x27   : > { %729 = vmatprep.subr.bf16.mxu0 %v787_v9  ;;  %746 = vmatprep.subr.bf16.mxu1 %v787_v9 }
  0x2a   : > { %730 = vmatpush3.bf16.msra.mxu0 %v787_v9  ;;  %754 = vmatpush3.bf16.msra.mxu1 %v787_v9 }
  0x2d   : > { %732 = vmatmul.mubr.bf16.vlgmr.msra.gmra.mxu0 %v789_v10  ;;  %736 = vmatmul.mubr.bf16.vlgmr.msra.gmra.mxu1 %v791_v11 }
  0xed   : > { %v733_v13 = vpop.f32.mrf.mxu0  ;;  %v737_v14 = vpop.f32.mrf.mxu1 }
  0xee   : > { %v441_v28 = vmul.f32 %v733_v13, %v733_v13  ;;  %v445_v40 = vmul.f32 %v737_v14, %v737_v14 }
  0xef   : > { %v385_v15 = vpop.f32.mrf.mxu0  ;;  %v401_v16 = vpop.f32.mrf.mxu1 }
  0xf0   : > { %v439_v23 = vmul.f32 %v385_v15, %v385_v15  ;;  %v443_v34 = vmul.f32 %v401_v16, %v401_v16 }
  0xf1   : > { %v734_v17 = vpop.f32.mrf.mxu0  ;;  %v738_v18 = vpop.f32.mrf.mxu1 }
  0xf2   : > { %v688_v19 = vpack.c.bf16 %v734_v17, %v733_v13  ;;  %v698_v20 = vpack.c.bf16 %v738_v18, %v737_v14  ;;  %v442_v31 = vmul.f32 %v734_v17, %v734_v17  ;;  %v446_v43 = vmul.f32 %v738_v18, %v738_v18 }
  0xf3   : > { %v388_v21 = vpop.f32.mrf.mxu0  ;;  %v404_v22 = vpop.f32.mrf.mxu1 }
  0xf4   : > { %700 = vst [vmem:[%s246_s26 + $0x8] sm:$0xff] %v688_v19   ;;  %v423_v24 = vadd.f32 %v388_v21, %v385_v15  ;;  %v440_v25 = vmul.f32 %v388_v21, %v388_v21  ;;  %v683_v26 = vpack.c.bf16 %v388_v21, %v385_v15  ;;  %702 = vst [vmem:[%s246_s26 + $0x18] sm:$0xff] %v698_v20  }
  0xf5   : > { %v693_v27 = vpack.c.bf16 %v404_v22, %v401_v16  ;;  %v444_v38 = vmul.f32 %v404_v22, %v404_v22 }
  0xf6   : > { %v424_v29 = vadd.f32 %v733_v13, %v423_v24  ;;  %v447_v30 = vadd.f32 %v440_v25, %v439_v23  ;;  %684 = vst [vmem:[%s246_s26] sm:$0xff] %v683_v26  }
  0xf7   : > { %701 = vst [vmem:[%s246_s26 + $0x10] sm:$0xff] %v693_v27  }
  0xf8   : > { %v448_v32 = vadd.f32 %v447_v30, %v441_v28  ;;  %v425_v33 = vadd.f32 %v734_v17, %v424_v29 }
  0xfa   : > { %v426_v35 = vadd.f32 %v425_v33, %v401_v16  ;;  %v449_v36 = vadd.f32 %v448_v32, %v442_v31 }
  0xfc   : > { %v427_v37 = vadd.f32 %v426_v35, %v404_v22  ;;  %v450_v39 = vadd.f32 %v449_v36, %v443_v34 }
  0xfe   : > { %v428_v41 = vadd.f32 %v737_v14, %v427_v37  ;;  %v451_v42 = vadd.f32 %v450_v39, %v444_v38 }
 0x100   : > { %v429_v44 = vadd.f32 %v738_v18, %v428_v41  ;;  %v452_v45 = vadd.f32 %v451_v42, %v445_v40 }
 0x102   : > { %v430_v46 = vrot.slane %v429_v44, 4  ;;  %v453_v47 = vadd.f32 %v452_v45, %v446_v43 }
 0x104   : > { %v431_v48 = vadd.f32 %v430_v46, %v429_v44  ;;  %v454_v49 = vrot.slane %v453_v47, 4 }
 0x106   : > { %v432_v50 = vrot.slane %v431_v48, 2  ;;  %v455_v51 = vadd.f32 %v454_v49, %v453_v47 }
 0x108   : > { %v433_v52 = vadd.f32 %v432_v50, %v431_v48  ;;  %v456_v53 = vrot.slane %v455_v51, 2 }
 0x10a   : > { %v434_v54 = vrot.slane %v433_v52, 1  ;;  %v457_v55 = vadd.f32 %v456_v53, %v455_v51 }
 0x10c   : > { %v435_v57 = vadd.f32 %v434_v54, %v433_v52  ;;  %v458_v58 = vrot.slane %v457_v55, 1 }
 0x10e   : > { %v436_v60 = vadd.f32 %v435_v57, %v422_v56  ;;  %v459_v61 = vadd.f32 %v458_v58, %v457_v55 }
 0x110   : > { %437 = vst [vmem:[%s902_s19] sm:$0x1] %v436_v60  ;;  %v460_v62 = vadd.f32 %v459_v61, %v438_v59 }
 0x112   : > { %461 = vst [vmem:[%s908_s22] sm:$0x1] %v460_v62 }
 0x113 PF: > { %s15_s17 = sadd.s32 1, %s814_s17   ;;  %s935_s15 = smov %s810_s16 }
 0x114   : > { %p12_p5 = scmp.ge.s32.totalorder %s15_s17, 4   ;;  %s936_s16 = smov %s938_s18 }
 0x116   :  { %14 = sbr.rel (!%p12_p5) target bundleno = 2 (0x2), region = 86 }

// kernel: discriminator_forward.8
= control target key start
LH: loop header
LB: loop body
LE: loop exit
PB: predicated region body
PF: predicated region fallthrough
CT: control target
= control target key end

     0   :  { %s937_s15 = smov 0   ;;  %s939_s16 = smov 0   ;;  %s1055_s0 = inlined_call_operand.vmem [shape: bf16[2,56,256], index: 0, kind: input, shape index: {}]   ;;  %s1056_s1 = inlined_call_operand.vmem [shape: bf16[256,128], index: 1, kind: input, shape index: {}]   ;;  %s1057_s2 = inlined_call_operand.vmem [shape: bf16[2,56,128], index: 2, kind: output, shape index: {0}]   ;;  %s1058_s3 = inlined_call_operand.vmem [shape: f32[2,1,128], index: 3, kind: output, shape index: {1}]   ;;  %s1059_s4 = inlined_call_operand.vmem [shape: f32[2,1,128], index: 4, kind: output, shape index: {2}]  }
   0x1   :  { %s941_s17 = smov 0  }
   0x2 LB: > { %s27_s18 = sadd.s32 1, %s905_s16  ;;  %p717_p0 = scmp.ge.s32.totalorder %s909_s17, 1  ;;  %s909_s17 = sphi %s941_s17, %s15_s17   ;;  %s905_s16 = sphi %s939_s16, %s1061_s16   ;;  %s901_s15 = sphi %s937_s15, %s1060_s15  }
   0x3   : > { %p29_p1 = scmp.ge.s32.totalorder %s27_s18, 2  ;;  %p189_p2 = scmp.lt.s32.totalorder %s909_s17, 3 }
   0x5   : > { %s1063_s18 = smov (%p29_p1, %s27_s18), 0  ;;  %p190_p3 = pnand %p717_p0, %p189_p2 }
   0x6   : > { %p231_p4 = scmp.lt.s32.totalorder (!%p190_p3), %s901_s15, 1 }
   0x7   : > { %193 = sbr.rel (%p190_p3) target bundleno = 279 (0x117), region = 28 }
   0xc   : > { %v860_v0 = vld [vmem:[%s1056_s1 + $0x78] sm:$0xff]   ;;  %v862_v2 = vld [vmem:[%s1056_s1 + $0x70] sm:$0xff]   ;;  %v864_v4 = vld [vmem:[%s1056_s1 + $0x68] sm:$0xff]   ;;  %s1065_s15 = smov (!%p231_p4, %s901_s15), 1  ;;  %v911_v25 = vmov 0.0  }
   0xd   : > { %v861_v1 = vld [vmem:[%s1056_s1 + $0x38] sm:$0xff]   ;;  %777 = vmatprep.subr.bf16.mxu0 %v860_v0  ;;  %817 = vmatprep.subr.bf16.mxu1 %v860_v0  ;;  %v863_v3 = vld [vmem:[%s1056_s1 + $0x30] sm:$0xff]   ;;  %v865_v5 = vld [vmem:[%s1056_s1 + $0x28] sm:$0xff]   ;;  %s833_s7 = smul.u32 56, %s1065_s15  ;;  %s1022_s9 = scalar_lea.vmem %s1058_s3, %s1065_s15 }
   0xe   : > { %778 = vmatpush3.bf16.msra.mxu0 %v861_v1  ;;  %825 = vmatpush3.bf16.msra.mxu1 %v861_v1  ;;  %v866_v6 = vld [vmem:[%s1056_s1 + $0x60] sm:$0xff]   ;;  %v868_v8 = vld [vmem:[%s1056_s1 + $0x58] sm:$0xff]   ;;  %v870_v10 = vld [vmem:[%s1056_s1 + $0x50] sm:$0xff]   ;;  %s1028_s12 = scalar_lea.vmem %s1059_s4, %s1065_s15  ;;  %498 = vst [vmem:[%s1022_s9] sm:$0x1] %v911_v25  ;;  %s834_s13 = smul.u32 28, %s1065_s15 }
   0xf   : > { %779 = vmatprep.subr.bf16.mxu0 %v862_v2  ;;  %818 = vmatprep.subr.bf16.mxu1 %v862_v2  ;;  %v867_v7 = vld [vmem:[%s1056_s1 + $0x20] sm:$0xff]   ;;  %s988_s14 = scalar_lea.vmem %s1055_s0, %s833_s7  ;;  %v869_v9 = vld [vmem:[%s1056_s1 + $0x18] sm:$0xff]   ;;  %v871_v13 = vld [vmem:[%s1056_s1 + $0x10] sm:$0xff]   ;;  %499 = vst [vmem:[%s1028_s12] sm:$0x1] %v911_v25 }
  0x10   : > { %v878_v11 = vld [vmem:[%s988_s14 + $0x4] ss:$8 sps:$4 sm:$0xff]   ;;  %v264_v18 = vld [vmem:[%s988_s14 + $0x30] sm:$0xff]  ;;  %v876_v19 = vld [vmem:[%s988_s14] ss:$8 sps:$4 sm:$0xff]   ;;  %s1036_s20 = scalar_lea.vmem %s1057_s2, %s834_s13 }
  0x11   : > { %v881_v12 = vld [vmem:[%s988_s14 + $0x24] ss:$8 sps:$4 sm:$0xff]   ;;  %462 = vmatprep.mubr.bf16.mxu0 %v878_v11  ;;  %v879_v20 = vld [vmem:[%s988_s14 + $0x20] ss:$8 sps:$4 sm:$0xff]   ;;  %v882_v21 = vld [vmem:[%s988_s14 + $0x14] ss:$8 sps:$4 sm:$0xff]   ;;  %v727_v22 = vcombine.high %v264_v18, %v264_v18  ;;  %v726_v24 = vcombine.low %v264_v18, %v264_v18 }
  0x12   : > { %780 = vmatpush3.bf16.msra.mxu0 %v863_v3  ;;  %826 = vmatpush3.bf16.msra.mxu1 %v863_v3  ;;  %v872_v14 = vld [vmem:[%s1056_s1 + $0x48] sm:$0xff]   ;;  %v874_v16 = vld [vmem:[%s1056_s1 + $0x40] sm:$0xff]   ;;  %v884_v23 = vld [vmem:[%s988_s14 + $0x10] ss:$8 sps:$4 sm:$0xff]  }
  0x13   : > { %781 = vmatprep.subr.bf16.mxu0 %v864_v4  ;;  %819 = vmatprep.subr.bf16.mxu1 %v864_v4  ;;  %v873_v15 = vld [vmem:[%s1056_s1 + $0x8] sm:$0xff]   ;;  %v875_v17 = vld [vmem:[%s1056_s1] sm:$0xff]  }
  0x14   : > { %478 = vmatprep.mubr.bf16.mxu1 %v881_v12 }
  0x16   : > { %782 = vmatpush3.bf16.msra.mxu0 %v865_v5  ;;  %827 = vmatpush3.bf16.msra.mxu1 %v865_v5 }
  0x17   : > { %783 = vmatprep.subr.bf16.mxu0 %v866_v6  ;;  %820 = vmatprep.subr.bf16.mxu1 %v866_v6 }
  0x1a   : > { %784 = vmatpush3.bf16.msra.mxu0 %v867_v7  ;;  %828 = vmatpush3.bf16.msra.mxu1 %v867_v7 }
  0x1b   : > { %785 = vmatprep.subr.bf16.mxu0 %v868_v8  ;;  %821 = vmatprep.subr.bf16.mxu1 %v868_v8 }
  0x1e   : > { %786 = vmatpush3.bf16.msra.mxu0 %v869_v9  ;;  %829 = vmatpush3.bf16.msra.mxu1 %v869_v9 }
  0x1f   : > { %787 = vmatprep.subr.bf16.mxu0 %v870_v10  ;;  %822 = vmatprep.subr.bf16.mxu1 %v870_v10 }
  0x22   : > { %788 = vmatpush3.bf16.msra.mxu0 %v871_v13  ;;  %830 = vmatpush3.bf16.msra.mxu1 %v871_v13 }
  0x23   : > { %789 = vmatprep.subr.bf16.mxu0 %v872_v14  ;;  %823 = vmatprep.subr.bf16.mxu1 %v872_v14 }
  0x26   : > { %790 = vmatpush3.bf16.msra.mxu0 %v873_v15  ;;  %831 = vmatpush3.bf16.msra.mxu1 %v873_v15 }
  0x27   : > { %791 = vmatprep.subr.bf16.mxu0 %v874_v16  ;;  %824 = vmatprep.subr.bf16.mxu1 %v874_v16 }
  0x2a   : > { %792 = vmatpush3.bf16.msra.mxu0 %v875_v17  ;;  %832 = vmatpush3.bf16.msra.mxu1 %v875_v17  ;;  %v500_v17 = vld [vmem:[%s1022_s9] sm:$0x1] }
  0x2d   : > { %463 = vmatmul.mubr.bf16.vlgmr.msra.gmra.mxu0 %v876_v19  ;;  %479 = vmatmul.mubr.bf16.vlgmr.msra.gmra.mxu1 %v879_v20  ;;  %v515_v20 = vld [vmem:[%s1028_s12] sm:$0x1] }
  0x2e   : > { %470 = vmatprep.mubr.bf16.mxu0 %v882_v21  ;;  %486 = vmatprep.mubr.bf16.mxu1 %v727_v22 }
  0x35   : > { %471 = vmatmul.mubr.bf16.gmra.mxu0 %v884_v23  ;;  %487 = vmatmul.mubr.bf16.gmra.mxu1 %v726_v24 }
  0xed   : > { %v793_v26 = vpop.f32.mrf.mxu0  ;;  %v805_v27 = vpop.f32.mrf.mxu1 }
  0xef   : > { %v794_v28 = vpop.f32.mrf.mxu0  ;;  %v806_v29 = vpop.f32.mrf.mxu1 }
  0xf0   : > { %v807_v33 = vadd.f32 %v806_v29, %v805_v27  ;;  %v795_v35 = vadd.f32 %v794_v28, %v793_v26 }
  0xf1   : > { %v796_v30 = vpop.f32.mrf.mxu0  ;;  %v808_v31 = vpop.f32.mrf.mxu1 }
  0xf2   : > { %v516_v49 = vmul.f32 %v795_v35, %v795_v35  ;;  %v520_v62 = vmul.f32 %v807_v33, %v807_v33 }
  0xf3   : > { %v797_v32 = vpop.f32.mrf.mxu0  ;;  %v809_v34 = vpop.f32.mrf.mxu1 }
  0xf4   : > { %v798_v36 = vadd.f32 %v797_v32, %v796_v30  ;;  %v810_v37 = vadd.f32 %v809_v34, %v808_v31 }
  0xf5   : > { %v799_v38 = vpop.f32.mrf.mxu0  ;;  %v811_v39 = vpop.f32.mrf.mxu1 }
  0xf6   : > { %v763_v40 = vpack.c.bf16 %v798_v36, %v795_v35  ;;  %v773_v42 = vpack.c.bf16 %v810_v37, %v807_v33  ;;  %v517_v44 = vmul.f32 %v798_v36, %v798_v36  ;;  %v501_v50 = vadd.f32 %v798_v36, %v795_v35 }
  0xf7   : > { %v800_v41 = vpop.f32.mrf.mxu0  ;;  %v812_v43 = vpop.f32.mrf.mxu1  ;;  %v521_v1 = vmul.f32 %v810_v37, %v810_v37 }
  0xf8   : > { %764 = vst [vmem:[%s1036_s20] sm:$0xff] %v763_v40   ;;  %v801_v45 = vadd.f32 %v800_v41, %v799_v38  ;;  %v813_v46 = vadd.f32 %v812_v43, %v811_v39  ;;  %776 = vst [vmem:[%s1036_s20 + $0x10] sm:$0xff] %v773_v42   ;;  %v523_v55 = vadd.f32 %v517_v44, %v516_v49 }
  0xf9   : > { %v802_v47 = vpop.f32.mrf.mxu0  ;;  %v814_v48 = vpop.f32.mrf.mxu1 }
  0xfa   : > { %v518_v51 = vmul.f32 %v801_v45, %v801_v45  ;;  %v759_v52 = vpack.c.bf16 %v813_v46, %v813_v46  ;;  %v502_v56 = vadd.f32 %v801_v45, %v501_v50  ;;  %v522_v5 = vmul.f32 %v813_v46, %v813_v46 }
  0xfb   : > { %v803_v53 = vpop.f32.mrf.mxu0  ;;  %v815_v54 = vpop.f32.mrf.mxu1 }
  0xfc   : > { %v804_v57 = vadd.f32 %v803_v53, %v802_v47  ;;  %572 = vst [vmem:[%s1036_s20 + $0x18] sm:$0xf] %v759_v52  ;;  %v524_v58 = vadd.f32 %v523_v55, %v518_v51 }
  0xfe   : > { %v503_v59 = vadd.f32 %v804_v57, %v502_v56  ;;  %v519_v60 = vmul.f32 %v804_v57, %v804_v57  ;;  %v768_v61 = vpack.c.bf16 %v804_v57, %v801_v45 }
 0x100   : > { %v504_v63 = vadd.f32 %v807_v33, %v503_v59  ;;  %v525_v0 = vadd.f32 %v524_v58, %v519_v60  ;;  %775 = vst [vmem:[%s1036_s20 + $0x8] sm:$0xff] %v768_v61  }
 0x102   : > { %v526_v2 = vadd.f32 %v525_v0, %v520_v62  ;;  %v505_v3 = vadd.f32 %v810_v37, %v504_v63 }
 0x104   : > { %v506_v4 = vadd.f32 %v813_v46, %v505_v3  ;;  %v527_v6 = vadd.f32 %v526_v2, %v521_v1 }
 0x106   : > { %v507_v7 = vrot.slane %v506_v4, 4  ;;  %v528_v8 = vadd.f32 %v527_v6, %v522_v5 }
 0x108   : > { %v508_v9 = vadd.f32 %v507_v7, %v506_v4  ;;  %v529_v10 = vrot.slane %v528_v8, 4 }
 0x10a   : > { %v509_v11 = vrot.slane %v508_v9, 2  ;;  %v530_v12 = vadd.f32 %v529_v10, %v528_v8 }
 0x10c   : > { %v510_v13 = vadd.f32 %v509_v11, %v508_v9  ;;  %v531_v14 = vrot.slane %v530_v12, 2 }
 0x10e   : > { %v511_v15 = vrot.slane %v510_v13, 1  ;;  %v532_v16 = vadd.f32 %v531_v14, %v530_v12 }
 0x110   : > { %v512_v18 = vadd.f32 %v511_v15, %v510_v13  ;;  %v533_v19 = vrot.slane %v532_v16, 1 }
 0x112   : > { %v513_v21 = vadd.f32 %v512_v18, %v500_v17  ;;  %v534_v22 = vadd.f32 %v533_v19, %v532_v16 }
 0x114   : > { %514 = vst [vmem:[%s1022_s9] sm:$0x1] %v513_v21  ;;  %v535_v23 = vadd.f32 %v534_v22, %v515_v20 }
 0x116   : > { %536 = vst [vmem:[%s1028_s12] sm:$0x1] %v535_v23 }
 0x117 PF: > { %s15_s17 = sadd.s32 1, %s909_s17   ;;  %s1060_s15 = smov %s905_s16 }
 0x118   : > { %p12_p5 = scmp.ge.s32.totalorder %s15_s17, 4   ;;  %s1061_s16 = smov %s1063_s18 }
 0x11a   :  { %14 = sbr.rel (!%p12_p5) target bundleno = 2 (0x2), region = 86 }

// kernel: discriminator_forward.9
= control target key start
LH: loop header
LB: loop body
LE: loop exit
PB: predicated region body
PF: predicated region fallthrough
CT: control target
= control target key end

     0   :  { %s1033_s12 = smov 0   ;;  %s1035_s13 = smov 0   ;;  %s1173_s0 = inlined_call_operand.vmem [shape: bf16[2,40,512], index: 0, kind: input, shape index: {}]   ;;  %s1174_s1 = inlined_call_operand.vmem [shape: bf16[512,128], index: 1, kind: input, shape index: {}]   ;;  %s1175_s2 = inlined_call_operand.vmem [shape: f32[1,128], index: 2, kind: input, shape index: {}]   ;;  %s1176_s3 = inlined_call_operand.vmem [shape: f32[2,40,128], index: 3, kind: output, shape index: {}]  }
   0x1   :  { %s1037_s14 = smov 0  }
   0x2 LB: > { %s25_s15 = sadd.s32 1, %s1007_s13  ;;  %p777_p0 = scmp.ge.s32.totalorder %s1011_s14, 1  ;;  %s1011_s14 = sphi %s1037_s14, %s13_s14   ;;  %s1007_s13 = sphi %s1035_s13, %s1178_s13   ;;  %s1003_s12 = sphi %s1033_s12, %s1177_s12  }
   0x3   : > { %p27_p1 = scmp.ge.s32.totalorder %s25_s15, 2  ;;  %p159_p2 = scmp.lt.s32.totalorder %s1011_s14, 3 }
   0x5   : > { %s1180_s15 = smov (%p27_p1, %s25_s15), 0  ;;  %p160_p3 = pnand %p777_p0, %p159_p2 }
   0x6   : > { %p193_p4 = scmp.lt.s32.totalorder (!%p160_p3), %s1003_s12, 1 }
   0x7   : > { %163 = sbr.rel (%p160_p3) target bundleno = 299 (0x12b), region = 32 }
   0xc   : > { %v921_v0 = vld [vmem:[%s1174_s1 + $0x78] sm:$0xff]   ;;  %v925_v4 = vld [vmem:[%s1174_s1 + $0x70] sm:$0xff]   ;;  %v929_v8 = vld [vmem:[%s1174_s1 + $0x68] sm:$0xff]   ;;  %s1182_s12 = smov (!%p193_p4, %s1003_s12), 1 }
   0xd   : > { %v922_v1 = vld [vmem:[%s1174_s1 + $0xf8] sm:$0xff]   ;;  %827 = vmatprep.subr.bf16.mxu0 %v921_v0  ;;  %v926_v5 = vld [vmem:[%s1174_s1 + $0xf0] sm:$0xff]   ;;  %v930_v9 = vld [vmem:[%s1174_s1 + $0xe8] sm:$0xff]   ;;  %s895_s22 = smul.u32 80, %s1182_s12 }
   0xe   : > { %v923_v2 = vld [vmem:[%s1174_s1 + $0x38] sm:$0xff]   ;;  %861 = vmatprep.subr.bf16.mxu1 %v922_v1  ;;  %v927_v6 = vld [vmem:[%s1174_s1 + $0x30] sm:$0xff]   ;;  %v931_v10 = vld [vmem:[%s1174_s1 + $0x28] sm:$0xff]   ;;  %s896_s17 = smul.u32 40, %s1182_s12 }
   0xf   : > { %v924_v3 = vld [vmem:[%s1174_s1 + $0xb8] sm:$0xff]   ;;  %828 = vmatpush3.bf16.msra.mxu0 %v923_v2  ;;  %v928_v7 = vld [vmem:[%s1174_s1 + $0xb0] sm:$0xff]   ;;  %v932_v11 = vld [vmem:[%s1174_s1 + $0xa8] sm:$0xff]   ;;  %s201_s6 = scalar_lea.vmem %s1173_s0, %s895_s22 }
  0x10   : > { %862 = vmatpush3.bf16.msra.mxu1 %v924_v3  ;;  %829 = vmatprep.subr.bf16.mxu0 %v925_v4  ;;  %v933_v12 = vld [vmem:[%s1174_s1 + $0x60] sm:$0xff]   ;;  %v937_v16 = vld [vmem:[%s1174_s1 + $0x58] sm:$0xff]   ;;  %v941_v20 = vld [vmem:[%s1174_s1 + $0x50] sm:$0xff]   ;;  %s211_s20 = scalar_lea.vmem %s1176_s3, %s896_s17 }
  0x11   : > { %863 = vmatprep.subr.bf16.mxu1 %v926_v5  ;;  %v934_v13 = vld [vmem:[%s1174_s1 + $0xe0] sm:$0xff]   ;;  %v938_v17 = vld [vmem:[%s1174_s1 + $0xd8] sm:$0xff]   ;;  %v942_v21 = vld [vmem:[%s1174_s1 + $0xd0] sm:$0xff]  }
  0x12   : > { %v935_v14 = vld [vmem:[%s1174_s1 + $0x20] sm:$0xff]   ;;  %v939_v18 = vld [vmem:[%s1174_s1 + $0x18] sm:$0xff]   ;;  %v943_v22 = vld [vmem:[%s1174_s1 + $0x10] sm:$0xff]  }
  0x13   : > { %830 = vmatpush3.bf16.msra.mxu0 %v927_v6  ;;  %v936_v15 = vld [vmem:[%s1174_s1 + $0xa0] sm:$0xff]   ;;  %v940_v19 = vld [vmem:[%s1174_s1 + $0x98] sm:$0xff]   ;;  %v944_v23 = vld [vmem:[%s1174_s1 + $0x90] sm:$0xff]  }
  0x14   : > { %864 = vmatpush3.bf16.msra.mxu1 %v928_v7  ;;  %831 = vmatprep.subr.bf16.mxu0 %v929_v8  ;;  %v945_v24 = vld [vmem:[%s1174_s1 + $0x48] sm:$0xff]   ;;  %v949_v28 = vld [vmem:[%s1174_s1 + $0x40] sm:$0xff]  }
  0x15   : > { %865 = vmatprep.subr.bf16.mxu1 %v930_v9  ;;  %v946_v25 = vld [vmem:[%s1174_s1 + $0xc8] sm:$0xff]   ;;  %v950_v29 = vld [vmem:[%s1174_s1 + $0xc0] sm:$0xff]  }
  0x16   : > { %v947_v26 = vld [vmem:[%s1174_s1 + $0x8] sm:$0xff]   ;;  %v951_v30 = vld [vmem:[%s1174_s1] sm:$0xff]  }
  0x17   : > { %832 = vmatpush3.bf16.msra.mxu0 %v931_v10  ;;  %v948_v27 = vld [vmem:[%s1174_s1 + $0x88] sm:$0xff]   ;;  %v952_v31 = vld [vmem:[%s1174_s1 + $0x80] sm:$0xff]  }
  0x18   : > { %866 = vmatpush3.bf16.msra.mxu1 %v932_v11  ;;  %833 = vmatprep.subr.bf16.mxu0 %v933_v12  ;;  %v953_v32 = vld [vmem:[%s201_s6] ss:$16 sps:$4 sm:$0xff]   ;;  %v955_v33 = vld [vmem:[%s201_s6 + $0x4] ss:$16 sps:$4 sm:$0xff]   ;;  %v956_v34 = vld [vmem:[%s201_s6 + $0x8] ss:$16 sps:$4 sm:$0xff]  }
  0x19   : > { %867 = vmatprep.subr.bf16.mxu1 %v934_v13  ;;  %v958_v35 = vld [vmem:[%s201_s6 + $0xc] ss:$16 sps:$4 sm:$0xff]   ;;  %573 = vmatprep.mubr.bf16.mxu0 %v955_v33  ;;  %v959_v36 = vld [vmem:[%s201_s6 + $0x24] ss:$16 sps:$4 sm:$0xff]   ;;  %v963_v40 = vld [vmem:[%s201_s6 + $0x20] ss:$16 sps:$4 sm:$0xff]  }
  0x1a   : > { %629 = vmatprep.mubr.bf16.mxu1 %v958_v35  ;;  %v961_v37 = vld [vmem:[%s201_s6 + $0x2c] ss:$16 sps:$4 sm:$0xff]   ;;  %v222_v38 = vld [vmem:[%s201_s6 + $0x40] sm:$0xff]  ;;  %v964_v41 = vld [vmem:[%s201_s6 + $0x28] ss:$16 sps:$4 sm:$0xff]  }
  0x1b   : > { %834 = vmatpush3.bf16.msra.mxu0 %v935_v14  ;;  %v223_v39 = vld [vmem:[%s201_s6 + $0x48] sm:$0xff]  ;;  %v790_v42 = vcombine.high %v222_v38, %v222_v38  ;;  %v789_v44 = vcombine.low %v222_v38, %v222_v38  ;;  %v780_v48 = vld [vmem:[%s1175_s2] ss:$0 sm:$0xff] }
  0x1c   : > { %868 = vmatpush3.bf16.msra.mxu1 %v936_v15  ;;  %835 = vmatprep.subr.bf16.mxu0 %v937_v16  ;;  %v792_v43 = vcombine.high %v223_v39, %v223_v39  ;;  %v791_v45 = vcombine.low %v223_v39, %v223_v39 }
  0x1d   : > { %869 = vmatprep.subr.bf16.mxu1 %v938_v17 }
  0x1f   : > { %836 = vmatpush3.bf16.msra.mxu0 %v939_v18 }
  0x20   : > { %870 = vmatpush3.bf16.msra.mxu1 %v940_v19  ;;  %837 = vmatprep.subr.bf16.mxu0 %v941_v20 }
  0x21   : > { %871 = vmatprep.subr.bf16.mxu1 %v942_v21 }
  0x23   : > { %838 = vmatpush3.bf16.msra.mxu0 %v943_v22 }
  0x24   : > { %872 = vmatpush3.bf16.msra.mxu1 %v944_v23  ;;  %839 = vmatprep.subr.bf16.mxu0 %v945_v24 }
  0x25   : > { %873 = vmatprep.subr.bf16.mxu1 %v946_v25 }
  0x27   : > { %840 = vmatpush3.bf16.msra.mxu0 %v947_v26 }
  0x28   : > { %874 = vmatpush3.bf16.msra.mxu1 %v948_v27  ;;  %841 = vmatprep.subr.bf16.mxu0 %v949_v28 }
  0x29   : > { %875 = vmatprep.subr.bf16.mxu1 %v950_v29 }
  0x2b   : > { %842 = vmatpush3.bf16.msra.mxu0 %v951_v30 }
  0x2c   : > { %876 = vmatpush3.bf16.msra.mxu1 %v952_v31 }
  0x2e   : > { %574 = vmatmul.mubr.bf16.vlgmr.msra.gmra.mxu0 %v953_v32 }
  0x2f   : > { %630 = vmatmul.mubr.bf16.vlgmr.msra.gmra.mxu1 %v956_v34  ;;  %581 = vmatprep.mubr.bf16.mxu0 %v959_v36 }
  0x30   : > { %637 = vmatprep.mubr.bf16.mxu1 %v961_v37 }
  0x36   : > { %582 = vmatmul.mubr.bf16.gmra.mxu0 %v963_v40 }
  0x37   : > { %638 = vmatmul.mubr.bf16.gmra.mxu1 %v964_v41  ;;  %589 = vmatprep.mubr.bf16.mxu0 %v790_v42 }
  0x38   : > { %645 = vmatprep.mubr.bf16.mxu1 %v792_v43 }
  0x3e   : > { %590 = vmatmul.mubr.bf16.gmra.mxu0 %v789_v44 }
  0x3f   : > { %646 = vmatmul.mubr.bf16.gmra.mxu1 %v791_v45 }
  0xee   : > { %v843_v46 = vpop.f32.mrf.mxu0 }
  0xef   : > { %v877_v47 = vpop.f32.mrf.mxu1 }
  0xf0   : > { %v844_v49 = vpop.f32.mrf.mxu0 }
  0xf1   : > { %v845_v50 = vadd.f32 %v844_v49, %v843_v46  ;;  %v878_v51 = vpop.f32.mrf.mxu1 }
  0xf2   : > { %v846_v52 = vpop.f32.mrf.mxu0  ;;  %v879_v54 = vadd.f32 %v878_v51, %v877_v47 }
  0xf3   : > { %v576_v53 = vadd.f32 %v845_v50, %v780_v48  ;;  %v880_v55 = vpop.f32.mrf.mxu1 }
  0xf4   : > { %v847_v56 = vpop.f32.mrf.mxu0 }
  0xf5   : > { %v632_v57 = vadd.f32 %v879_v54, %v576_v53  ;;  %v848_v58 = vadd.f32 %v847_v56, %v846_v52  ;;  %v881_v59 = vpop.f32.mrf.mxu1 }
  0xf6   : > { %v849_v60 = vpop.f32.mrf.mxu0  ;;  %v882_v63 = vadd.f32 %v881_v59, %v880_v55 }
  0xf7   : > { %v653_v61 = vsub.f32 0.0, %v632_v57  ;;  %v579_v62 = vadd.f32 %v848_v58, %v780_v48  ;;  %v883_v0 = vpop.f32.mrf.mxu1 }
  0xf8   : > { %v850_v1 = vpop.f32.mrf.mxu0 }
  0xf9   : > { %v658_v2 = vmul.f32 1.442695, %v653_v61  ;;  %v635_v3 = vadd.f32 %v882_v63, %v579_v62  ;;  %v851_v4 = vadd.f32 %v850_v1, %v849_v60  ;;  %v884_v5 = vpop.f32.mrf.mxu1 }
  0xfa   : > { %v852_v6 = vpop.f32.mrf.mxu0  ;;  %v885_v9 = vadd.f32 %v884_v5, %v883_v0 }
  0xfb   : > { %969 = vpow2.f32 %v658_v2  ;;  %v654_v7 = vsub.f32 0.0, %v635_v3  ;;  %v584_v8 = vadd.f32 %v851_v4, %v780_v48  ;;  %v886_v10 = vpop.f32.mrf.mxu1 }
  0xfc   : > { %v853_v11 = vpop.f32.mrf.mxu0 }
  0xfd   : > { %v660_v12 = vmul.f32 1.442695, %v654_v7  ;;  %v640_v13 = vadd.f32 %v885_v9, %v584_v8  ;;  %v854_v14 = vadd.f32 %v853_v11, %v852_v6  ;;  %v887_v15 = vpop.f32.mrf.mxu1 }
  0xfe   : > { %v855_v16 = vpop.f32.mrf.mxu0  ;;  %v888_v19 = vadd.f32 %v887_v15, %v886_v10 }
  0xff   : > { %971 = vpow2.f32 %v660_v12  ;;  %v655_v17 = vsub.f32 0.0, %v640_v13  ;;  %v587_v18 = vadd.f32 %v854_v14, %v780_v48  ;;  %v889_v20 = vpop.f32.mrf.mxu1 }
 0x100   : > { %v856_v21 = vpop.f32.mrf.mxu0 }
 0x101   : > { %v662_v22 = vmul.f32 1.442695, %v655_v17  ;;  %v643_v23 = vadd.f32 %v888_v19, %v587_v18  ;;  %v857_v24 = vadd.f32 %v856_v21, %v855_v16  ;;  %v890_v25 = vpop.f32.mrf.mxu1 }
 0x102   : > { %v858_v26 = vpop.f32.mrf.mxu0  ;;  %v891_v29 = vadd.f32 %v890_v25, %v889_v20 }
 0x103   : > { %973 = vpow2.f32 %v662_v22  ;;  %v656_v27 = vsub.f32 0.0, %v643_v23  ;;  %v592_v28 = vadd.f32 %v857_v24, %v780_v48  ;;  %v892_v30 = vpop.f32.mrf.mxu1 }
 0x104   : > { %v859_v31 = vpop.f32.mrf.mxu0 }
 0x105   : > { %v664_v32 = vmul.f32 1.442695, %v656_v27  ;;  %v648_v33 = vadd.f32 %v891_v29, %v592_v28  ;;  %v893_v34 = vpop.f32.mrf.mxu1 }
 0x107   : > { %975 = vpow2.f32 %v664_v32  ;;  %v657_v35 = vsub.f32 0.0, %v648_v33 }
 0x108   : > { %v970_v36 = vpop.eup %969 }
 0x109   : > { %v668_v37 = vadd.f32 1.0, %v970_v36  ;;  %v666_v38 = vmul.f32 1.442695, %v657_v35 }
 0x10b   : > { %977 = vrcp.f32 %v668_v37 }
 0x10c   : > { %v972_v39 = vpop.eup %971  ;;  %979 = vpow2.f32 %v666_v38 }
 0x10d   : > { %v669_v40 = vadd.f32 1.0, %v972_v39 }
 0x10f   : > { %981 = vrcp.f32 %v669_v40 }
 0x110   : > { %v974_v41 = vpop.eup %973 }
 0x111   : > { %v670_v42 = vadd.f32 1.0, %v974_v41 }
 0x113   : > { %983 = vrcp.f32 %v670_v42 }
 0x114   : > { %v976_v43 = vpop.eup %975 }
 0x115   : > { %v671_v44 = vadd.f32 1.0, %v976_v43 }
 0x117   : > { %985 = vrcp.f32 %v671_v44 }
 0x118   : > { %v978_v45 = vpop.eup %977 }
 0x119   : > { %v980_v46 = vpop.eup %979  ;;  %678 = vst [vmem:[%s211_s20] sm:$0xff] %v978_v45 }
 0x11a   : > { %v672_v47 = vadd.f32 1.0, %v980_v46 }
 0x11c   : > { %v982_v48 = vpop.eup %981  ;;  %987 = vrcp.f32 %v672_v47 }
 0x11d   : > { %679 = vst [vmem:[%s211_s20 + $0x8] sm:$0xff] %v982_v48 }
 0x120   : > { %v984_v49 = vpop.eup %983 }
 0x121   : > { %680 = vst [vmem:[%s211_s20 + $0x10] sm:$0xff] %v984_v49 }
 0x124   : > { %v986_v50 = vpop.eup %985 }
 0x125   : > { %681 = vst [vmem:[%s211_s20 + $0x18] sm:$0xff] %v986_v50 }
 0x129   : > { %v988_v51 = vpop.eup %987 }
 0x12a   : > { %682 = vst [vmem:[%s211_s20 + $0x20] sm:$0xff] %v988_v51 }
 0x12b PF: > { %s13_s14 = sadd.s32 1, %s1011_s14   ;;  %s1177_s12 = smov %s1007_s13 }
 0x12c   : > { %p10_p5 = scmp.ge.s32.totalorder %s13_s14, 4   ;;  %s1178_s13 = smov %s1180_s15 }
 0x12e   :  { %12 = sbr.rel (!%p10_p5) target bundleno = 2 (0x2), region = 62 }

</bundles_post_ra>
